<compile_context>
chip_gen: v7x
topology: tpu7x:2x2x1
jax: 0.10.0
libtpu: 0.0.40
codegen_flags: <defaults>
</compile_context>

<pallas_src>
import functools
import math

import jax
import jax.numpy as jnp
from jax.experimental import pallas as pl
from jax.experimental.pallas import tpu as pltpu

# float32 matches PyTorch numerics exactly; set to jnp.bfloat16 on v6e/v7x for
# ~2x MXU throughput (elementwise math is kept in float32 regardless).
MATMUL_DTYPE = jnp.float32


def _layer_norm(y, w, b, eps):
    mu = jnp.mean(y, axis=-1, keepdims=True)
    yc = y - mu
    var = jnp.mean(yc * yc, axis=-1, keepdims=True)
    return yc * jax.lax.rsqrt(var + eps) * w + b


def encoder_block_kernel(x_ref, wq_ref, bq_ref, wk_ref, bk_ref, wv_ref, bv_ref,
                         wo_ref, bo_ref, ln1w_ref, ln1b_ref,
                         w1_ref, b1_ref, w2_ref, b2_ref,
                         ln2w_ref, ln2b_ref, out_ref,
                         *, batch, seq, num_heads, eps):
    M, D = x_ref.shape
    hd = D // num_heads

    x = x_ref[...]                                    # (B*S, D) float32
    xc = x.astype(MATMUL_DTYPE)

    # ---- QKV projections over the flattened (B*S, D) batch (head-major cols).
    # 1/sqrt(hd) is already folded into wq / bq (see prepare_params).
    q_all = jnp.dot(xc, wq_ref[...], preferred_element_type=jnp.float32) + bq_ref[...]
    k_all = jnp.dot(xc, wk_ref[...], preferred_element_type=jnp.float32) + bk_ref[...]
    v_all = jnp.dot(xc, wv_ref[...], preferred_element_type=jnp.float32) + bv_ref[...]

    wo = wo_ref[...]                                  # (D, D), rows head-major

    # ---- per-batch, per-head attention; o-projection accumulated per head.
    dn = (((1,), (1,)), ((), ()))                     # contract head dim, no k.T
    blocks = []
    for b in range(batch):                            # static, tiny (B=2)
        r0 = b * seq
        qb = q_all[r0:r0 + seq, :]
        kb = k_all[r0:r0 + seq, :]
        vb = v_all[r0:r0 + seq, :]
        ao = jnp.zeros((seq, D), jnp.float32)
        for h in range(num_heads):                    # static, tiny (H=4)
            c0 = h * hd
            qh = qb[:, c0:c0 + hd]
            kh = kb[:, c0:c0 + hd]
            vh = vb[:, c0:c0 + hd]
            logits = jax.lax.dot_general(
                qh.astype(MATMUL_DTYPE), kh.astype(MATMUL_DTYPE), dn,
                preferred_element_type=jnp.float32)    # (S, S)
            logits = logits - jnp.max(logits, axis=-1, keepdims=True)
            p = jnp.exp(logits)
            denom = jnp.sum(p, axis=-1, keepdims=True)
            attn = p * pl.reciprocal(denom, approx=True)   # EUP, not VPU divide
            hv = jnp.dot(attn.astype(MATMUL_DTYPE), vh.astype(MATMUL_DTYPE),
                         preferred_element_type=jnp.float32)   # (S, hd)
            # Sublane-aligned row slice of Wo; accumulating over heads equals
            # concat(head outputs) @ Wo.
            ao = ao + jnp.dot(hv.astype(MATMUL_DTYPE), wo[c0:c0 + hd, :],
                              preferred_element_type=jnp.float32)
        blocks.append(ao)
    attn_out = jnp.concatenate(blocks, axis=0) + bo_ref[...]       # (B*S, D)

    # ---- residual + LayerNorm1 (dropout p=0.0 -> identity)
    x1 = _layer_norm(x + attn_out, ln1w_ref[...], ln1b_ref[...], eps)

    # ---- feed-forward: Linear -> SiLU -> Linear (flattened over B*S)
    x1c = x1.astype(MATMUL_DTYPE)
    h1 = jnp.dot(x1c, w1_ref[...], preferred_element_type=jnp.float32) + b1_ref[...]
    h1 = h1 * jax.nn.sigmoid(h1)                      # SiLU, f32 elementwise
    ff = jnp.dot(h1.astype(MATMUL_DTYPE), w2_ref[...],
                 preferred_element_type=jnp.float32) + b2_ref[...]

    # ---- residual + LayerNorm2
    x2 = _layer_norm(x1 + ff, ln2w_ref[...], ln2b_ref[...], eps)

    out_ref[...] = x2.astype(out_ref.dtype)


def prepare_params(params, *, num_heads):
    """One-time conversion of PyTorch-layout weights into kernel layout.

    Hoisted out of the per-call wrapper: transposes, head-major Q/K/V split,
    and folding of the 1/sqrt(head_dim) attention scale into the Q projection.
    """
    D = params["wo"].shape[0]
    hd = D // num_heads
    scale = 1.0 / math.sqrt(hd)

    # qkv_proj rows are head-major [q_h | k_h | v_h] blocks of hd rows each.
    wqkv = params["wqkv"].reshape(num_heads, 3, hd, D)     # (H, 3, hd, D)
    bqkv = params["bqkv"].reshape(num_heads, 3, hd)        # (H, 3, hd)
    wq = (wqkv[:, 0] * scale).reshape(D, D)                # (out head-major, in)
    wk = wqkv[:, 1].reshape(D, D)
    wv = wqkv[:, 2].reshape(D, D)
    bq = (bqkv[:, 0] * scale).reshape(1, D)
    bk = bqkv[:, 1].reshape(1, D)
    bv = bqkv[:, 2].reshape(1, D)

    mm = MATMUL_DTYPE
    f32 = jnp.float32
    return {
        "wq": jnp.asarray(wq.T, mm),   "bq": jnp.asarray(bq, f32),
        "wk": jnp.asarray(wk.T, mm),   "bk": jnp.asarray(bk, f32),
        "wv": jnp.asarray(wv.T, mm),   "bv": jnp.asarray(bv, f32),
        "wo": jnp.asarray(params["wo"].T, mm),              # (D_in head-major, D_out)
        "bo": jnp.asarray(params["bo"].reshape(1, D), f32),
        "ln1w": jnp.asarray(params["ln1w"].reshape(1, D), f32),
        "ln1b": jnp.asarray(params["ln1b"].reshape(1, D), f32),
        "w1": jnp.asarray(params["w1"].T, mm),               # (D, F)
        "b1": jnp.asarray(params["b1"].reshape(1, -1), f32),
        "w2": jnp.asarray(params["w2"].T, mm),               # (F, D)
        "b2": jnp.asarray(params["b2"].reshape(1, D), f32),
        "ln2w": jnp.asarray(params["ln2w"].reshape(1, D), f32),
        "ln2b": jnp.asarray(params["ln2b"].reshape(1, D), f32),
    }


def encoder_block(x, prepared, *, num_heads, eps=1e-5):
    """Forward pass.  `prepared` is the output of prepare_params (cached)."""
    B, S, D = x.shape
    M = B * S
    hd = D // num_heads
    F = prepared["w1"].shape[1]
    x2d = x.reshape(M, D)

    order = ["wq", "bq", "wk", "bk", "wv", "bv", "wo", "bo",
             "ln1w", "ln1b", "w1", "b1", "w2", "b2", "ln2w", "ln2b"]
    weights = [prepared[k] for k in order]

    def full_spec(a):
        nd = a.ndim
        return pl.BlockSpec(a.shape, lambda i, _nd=nd: (0,) * _nd)

    kernel = functools.partial(encoder_block_kernel, batch=B, seq=S,
                               num_heads=num_heads, eps=eps)

    flops = (2 * M * D * 3 * D                                    # q/k/v projections
             + B * num_heads * (4 * S * S * hd + 2 * S * hd * D)  # attention + o-proj
             + 2 * M * D * F + 2 * M * F * D)                     # FFN
    transcendentals = B * num_heads * S * S + M * F + 4 * M       # exp, sigmoid, rsqrt/rcp
    bytes_accessed = 4 * 2 * M * D + sum(int(w.size) * w.dtype.itemsize for w in weights)

    out2d = pl.pallas_call(
        kernel,
        out_shape=jax.ShapeDtypeStruct((M, D), x.dtype),
        grid_spec=pltpu.PrefetchScalarGridSpec(
            num_scalar_prefetch=0,
            grid=(1,),
            in_specs=[full_spec(x2d)] + [full_spec(w) for w in weights],
            out_specs=full_spec(x2d),
        ),
        compiler_params=pltpu.CompilerParams(
            dimension_semantics=("arbitrary",),
            vmem_limit_bytes=32 * 1024 * 1024),
        cost_estimate=pl.CostEstimate(flops=flops,
                                      transcendentals=transcendentals,
                                      bytes_accessed=bytes_accessed),
    )(x2d, *weights)
    return out2d.reshape(B, S, D)


def encoder_block_ref(x, params, *, num_heads, eps=1e-5):
    """Pure-JAX reference mirroring the PyTorch forward (dropout p=0)."""
    B, S, D = x.shape
    hd = D // num_heads
    qkv = x @ params["wqkv"].T + params["bqkv"]                   # (B,S,3D)
    qkv = qkv.reshape(B, S, num_heads, 3 * hd).transpose(0, 2, 1, 3)
    q, k, v = jnp.split(qkv, 3, axis=-1)
    logits = jnp.einsum("bhqd,bhkd->bhqk", q, k) / jnp.sqrt(jnp.float32(hd))
    attn = jax.nn.softmax(logits, axis=-1)
    vals = jnp.einsum("bhqk,bhkd->bhqd", attn, v)
    vals = vals.transpose(0, 2, 1, 3).reshape(B, S, D)
    o = vals @ params["wo"].T + params["bo"]

    def layer_norm(y, w, b):
        mu = jnp.mean(y, axis=-1, keepdims=True)
        var = jnp.mean((y - mu) ** 2, axis=-1, keepdims=True)
        return (y - mu) * jax.lax.rsqrt(var + eps) * w + b

    x = layer_norm(x + o, params["ln1w"], params["ln1b"])
    h1 = x @ params["w1"].T + params["b1"]
    h1 = h1 * jax.nn.sigmoid(h1)
    ff = h1 @ params["w2"].T + params["b2"]
    return layer_norm(x + ff, params["ln2w"], params["ln2b"])


if __name__ == "__main__":
    # Shapes consistent with the module: batch=2, seq=8, input_dim=32,
    # num_heads=4, dim_feedforward=64.
    B, S, D, H, F = 2, 8, 32, 4, 64

    key = jax.random.PRNGKey(0)
    keys = jax.random.split(key, 8)
    params = {
        "wqkv": 0.05 * jax.random.normal(keys[0], (3 * D, D), jnp.float32),
        "bqkv": 0.01 * jax.random.normal(keys[1], (3 * D,), jnp.float32),
        "wo":   0.05 * jax.random.normal(keys[2], (D, D), jnp.float32),
        "bo":   0.01 * jax.random.normal(keys[3], (D,), jnp.float32),
        "ln1w": jnp.ones((D,), jnp.float32),
        "ln1b": jnp.zeros((D,), jnp.float32),
        "w1":   0.05 * jax.random.normal(keys[4], (F, D), jnp.float32),
        "b1":   0.01 * jax.random.normal(keys[5], (F,), jnp.float32),
        "w2":   0.05 * jax.random.normal(keys[6], (D, F), jnp.float32),
        "b2":   0.01 * jax.random.normal(keys[7], (D,), jnp.float32),
        "ln2w": jnp.ones((D,), jnp.float32),
        "ln2b": jnp.zeros((D,), jnp.float32),
    }

    x = jax.random.normal(jax.random.PRNGKey(42), (B, S, D), jnp.float32)

    prepared = prepare_params(params, num_heads=H)   # one-time weight-layout prep
    out = encoder_block(x, prepared, num_heads=H)
    out = jax.block_until_ready(out)

    ref = encoder_block_ref(x, params, num_heads=H)
    assert out.shape == (B, S, D)
    err = float(jnp.max(jnp.abs(out - ref)))
    # Tolerance covers the approx=True (EUP) reciprocal in the softmax.
    assert jnp.allclose(out, ref, atol=2e-3, rtol=2e-3), f"mismatch vs reference, max err={err}"

    print("KERNEL_OK")
</pallas_src>

<mosaic_0001>
module attributes {stable_mosaic.version = 11 : i64} {
  func.func @encoder_block_kernel(%arg0: i32, %arg1: memref<16x32xf32, #tpu.memory_space<vmem>>, %arg2: memref<32x32xf32, #tpu.memory_space<vmem>>, %arg3: memref<1x32xf32, #tpu.memory_space<vmem>>, %arg4: memref<32x32xf32, #tpu.memory_space<vmem>>, %arg5: memref<1x32xf32, #tpu.memory_space<vmem>>, %arg6: memref<32x32xf32, #tpu.memory_space<vmem>>, %arg7: memref<1x32xf32, #tpu.memory_space<vmem>>, %arg8: memref<32x32xf32, #tpu.memory_space<vmem>>, %arg9: memref<1x32xf32, #tpu.memory_space<vmem>>, %arg10: memref<1x32xf32, #tpu.memory_space<vmem>>, %arg11: memref<1x32xf32, #tpu.memory_space<vmem>>, %arg12: memref<32x64xf32, #tpu.memory_space<vmem>>, %arg13: memref<1x64xf32, #tpu.memory_space<vmem>>, %arg14: memref<64x32xf32, #tpu.memory_space<vmem>>, %arg15: memref<1x32xf32, #tpu.memory_space<vmem>>, %arg16: memref<1x32xf32, #tpu.memory_space<vmem>>, %arg17: memref<1x32xf32, #tpu.memory_space<vmem>>, %arg18: memref<16x32xf32, #tpu.memory_space<vmem>>) attributes {dimension_semantics = [#tpu.dimension_semantics<arbitrary>], iteration_bounds = array<i64: 1>, scalar_prefetch = 0 : i64, scratch_operands = 0 : i64, tpu.core_type = #tpu.core_type<tc>, window_params = [{pipeline_mode = #tpu.pipeline_mode<synchronous>, transform_indices = @transform_0, window_bounds = array<i64: 16, 32>}, {pipeline_mode = #tpu.pipeline_mode<synchronous>, transform_indices = @transform_1, window_bounds = array<i64: 32, 32>}, {pipeline_mode = #tpu.pipeline_mode<synchronous>, transform_indices = @transform_2, window_bounds = array<i64: 1, 32>}, {pipeline_mode = #tpu.pipeline_mode<synchronous>, transform_indices = @transform_3, window_bounds = array<i64: 32, 32>}, {pipeline_mode = #tpu.pipeline_mode<synchronous>, transform_indices = @transform_4, window_bounds = array<i64: 1, 32>}, {pipeline_mode = #tpu.pipeline_mode<synchronous>, transform_indices = @transform_5, window_bounds = array<i64: 32, 32>}, {pipeline_mode = #tpu.pipeline_mode<synchronous>, transform_indices = @transform_6, window_bounds = array<i64: 1, 32>}, {pipeline_mode = #tpu.pipeline_mode<synchronous>, transform_indices = @transform_7, window_bounds = array<i64: 32, 32>}, {pipeline_mode = #tpu.pipeline_mode<synchronous>, transform_indices = @transform_8, window_bounds = array<i64: 1, 32>}, {pipeline_mode = #tpu.pipeline_mode<synchronous>, transform_indices = @transform_9, window_bounds = array<i64: 1, 32>}, {pipeline_mode = #tpu.pipeline_mode<synchronous>, transform_indices = @transform_10, window_bounds = array<i64: 1, 32>}, {pipeline_mode = #tpu.pipeline_mode<synchronous>, transform_indices = @transform_11, window_bounds = array<i64: 32, 64>}, {pipeline_mode = #tpu.pipeline_mode<synchronous>, transform_indices = @transform_12, window_bounds = array<i64: 1, 64>}, {pipeline_mode = #tpu.pipeline_mode<synchronous>, transform_indices = @transform_13, window_bounds = array<i64: 64, 32>}, {pipeline_mode = #tpu.pipeline_mode<synchronous>, transform_indices = @transform_14, window_bounds = array<i64: 1, 32>}, {pipeline_mode = #tpu.pipeline_mode<synchronous>, transform_indices = @transform_15, window_bounds = array<i64: 1, 32>}, {pipeline_mode = #tpu.pipeline_mode<synchronous>, transform_indices = @transform_16, window_bounds = array<i64: 1, 32>}, {pipeline_mode = #tpu.pipeline_mode<synchronous>, transform_indices = @transform_17, window_bounds = array<i64: 16, 32>}]} {
    %c0 = arith.constant 0 : index
    %c0_0 = arith.constant 0 : index
    %0 = vector.load %arg1[%c0, %c0_0] : memref<16x32xf32, #tpu.memory_space<vmem>>, vector<16x32xf32>
    %c0_1 = arith.constant 0 : index
    %c0_2 = arith.constant 0 : index
    %1 = vector.load %arg2[%c0_1, %c0_2] : memref<32x32xf32, #tpu.memory_space<vmem>>, vector<32x32xf32>
    %cst = arith.constant dense<0.000000e+00> : vector<16x32xf32>
    %2 = tpu.matmul %0, %1, %cst {dimension_numbers = #tpu.dot_dimension_numbers<[1], [0], [0], [1], [0, 0, 1, 1], [], []>} : vector<16x32xf32>, vector<32x32xf32>, vector<16x32xf32> -> vector<16x32xf32>
    %c0_3 = arith.constant 0 : index
    %c0_4 = arith.constant 0 : index
    %3 = vector.load %arg3[%c0_3, %c0_4] : memref<1x32xf32, #tpu.memory_space<vmem>>, vector<1x32xf32>
    %4 = vector.broadcast %3 : vector<1x32xf32> to vector<16x32xf32>
    %5 = arith.addf %2, %4 : vector<16x32xf32>
    %c0_5 = arith.constant 0 : index
    %c0_6 = arith.constant 0 : index
    %6 = vector.load %arg4[%c0_5, %c0_6] : memref<32x32xf32, #tpu.memory_space<vmem>>, vector<32x32xf32>
    %cst_7 = arith.constant dense<0.000000e+00> : vector<16x32xf32>
    %7 = tpu.matmul %0, %6, %cst_7 {dimension_numbers = #tpu.dot_dimension_numbers<[1], [0], [0], [1], [0, 0, 1, 1], [], []>} : vector<16x32xf32>, vector<32x32xf32>, vector<16x32xf32> -> vector<16x32xf32>
    %c0_8 = arith.constant 0 : index
    %c0_9 = arith.constant 0 : index
    %8 = vector.load %arg5[%c0_8, %c0_9] : memref<1x32xf32, #tpu.memory_space<vmem>>, vector<1x32xf32>
    %9 = vector.broadcast %8 : vector<1x32xf32> to vector<16x32xf32>
    %10 = arith.addf %7, %9 : vector<16x32xf32>
    %c0_10 = arith.constant 0 : index
    %c0_11 = arith.constant 0 : index
    %11 = vector.load %arg6[%c0_10, %c0_11] : memref<32x32xf32, #tpu.memory_space<vmem>>, vector<32x32xf32>
    %cst_12 = arith.constant dense<0.000000e+00> : vector<16x32xf32>
    %12 = tpu.matmul %0, %11, %cst_12 {dimension_numbers = #tpu.dot_dimension_numbers<[1], [0], [0], [1], [0, 0, 1, 1], [], []>} : vector<16x32xf32>, vector<32x32xf32>, vector<16x32xf32> -> vector<16x32xf32>
    %c0_13 = arith.constant 0 : index
    %c0_14 = arith.constant 0 : index
    %13 = vector.load %arg7[%c0_13, %c0_14] : memref<1x32xf32, #tpu.memory_space<vmem>>, vector<1x32xf32>
    %14 = vector.broadcast %13 : vector<1x32xf32> to vector<16x32xf32>
    %15 = arith.addf %12, %14 : vector<16x32xf32>
    %c0_15 = arith.constant 0 : index
    %c0_16 = arith.constant 0 : index
    %16 = vector.load %arg8[%c0_15, %c0_16] : memref<32x32xf32, #tpu.memory_space<vmem>>, vector<32x32xf32>
    %17 = vector.extract_strided_slice %5 {offsets = [0, 0], sizes = [8, 32], strides = [1, 1]} : vector<16x32xf32> to vector<8x32xf32>
    %18 = vector.extract_strided_slice %10 {offsets = [0, 0], sizes = [8, 32], strides = [1, 1]} : vector<16x32xf32> to vector<8x32xf32>
    %19 = vector.extract_strided_slice %15 {offsets = [0, 0], sizes = [8, 32], strides = [1, 1]} : vector<16x32xf32> to vector<8x32xf32>
    %cst_17 = arith.constant 0.000000e+00 : f32
    %20 = vector.broadcast %cst_17 : f32 to vector<8x32xf32>
    %21 = vector.extract_strided_slice %17 {offsets = [0, 0], sizes = [8, 8], strides = [1, 1]} : vector<8x32xf32> to vector<8x8xf32>
    %22 = vector.extract_strided_slice %18 {offsets = [0, 0], sizes = [8, 8], strides = [1, 1]} : vector<8x32xf32> to vector<8x8xf32>
    %23 = vector.extract_strided_slice %19 {offsets = [0, 0], sizes = [8, 8], strides = [1, 1]} : vector<8x32xf32> to vector<8x8xf32>
    %cst_18 = arith.constant dense<0.000000e+00> : vector<8x8xf32>
    %24 = tpu.matmul %21, %22, %cst_18 {dimension_numbers = #tpu.dot_dimension_numbers<[1], [1], [0], [0], [0, 0, 1, 0], [], []>} : vector<8x8xf32>, vector<8x8xf32>, vector<8x8xf32> -> vector<8x8xf32>
    %cst_19 = arith.constant dense<0xFF800000> : vector<8xf32>
    %25 = vector.multi_reduction <maximumf>, %24, %cst_19 [1] : vector<8x8xf32> to vector<8xf32>
    %26 = vector.shape_cast %25 : vector<8xf32> to vector<8x1xf32>
    %27 = vector.broadcast %26 : vector<8x1xf32> to vector<8x8xf32>
    %28 = arith.subf %24, %27 : vector<8x8xf32>
    %29 = math.exp %28 : vector<8x8xf32>
    %cst_20 = arith.constant dense<0.000000e+00> : vector<8xf32>
    %30 = vector.multi_reduction <add>, %29, %cst_20 [1] : vector<8x8xf32> to vector<8xf32>
    %31 = vector.shape_cast %30 : vector<8xf32> to vector<8x1xf32>
    %32 = tpu.reciprocal %31 {approx = true} : vector<8x1xf32> -> vector<8x1xf32>
    %33 = vector.broadcast %32 : vector<8x1xf32> to vector<8x8xf32>
    %34 = arith.mulf %29, %33 : vector<8x8xf32>
    %cst_21 = arith.constant dense<0.000000e+00> : vector<8x8xf32>
    %35 = tpu.matmul %34, %23, %cst_21 {dimension_numbers = #tpu.dot_dimension_numbers<[1], [0], [0], [1], [0, 0, 1, 1], [], []>} : vector<8x8xf32>, vector<8x8xf32>, vector<8x8xf32> -> vector<8x8xf32>
    %36 = vector.extract_strided_slice %16 {offsets = [0, 0], sizes = [8, 32], strides = [1, 1]} : vector<32x32xf32> to vector<8x32xf32>
    %cst_22 = arith.constant dense<0.000000e+00> : vector<8x32xf32>
    %37 = tpu.matmul %35, %36, %cst_22 {dimension_numbers = #tpu.dot_dimension_numbers<[1], [0], [0], [1], [0, 0, 1, 1], [], []>} : vector<8x8xf32>, vector<8x32xf32>, vector<8x32xf32> -> vector<8x32xf32>
    %38 = arith.addf %20, %37 : vector<8x32xf32>
    %39 = vector.extract_strided_slice %17 {offsets = [0, 8], sizes = [8, 8], strides = [1, 1]} : vector<8x32xf32> to vector<8x8xf32>
    %40 = vector.extract_strided_slice %18 {offsets = [0, 8], sizes = [8, 8], strides = [1, 1]} : vector<8x32xf32> to vector<8x8xf32>
    %41 = vector.extract_strided_slice %19 {offsets = [0, 8], sizes = [8, 8], strides = [1, 1]} : vector<8x32xf32> to vector<8x8xf32>
    %cst_23 = arith.constant dense<0.000000e+00> : vector<8x8xf32>
    %42 = tpu.matmul %39, %40, %cst_23 {dimension_numbers = #tpu.dot_dimension_numbers<[1], [1], [0], [0], [0, 0, 1, 0], [], []>} : vector<8x8xf32>, vector<8x8xf32>, vector<8x8xf32> -> vector<8x8xf32>
    %cst_24 = arith.constant dense<0xFF800000> : vector<8xf32>
    %43 = vector.multi_reduction <maximumf>, %42, %cst_24 [1] : vector<8x8xf32> to vector<8xf32>
    %44 = vector.shape_cast %43 : vector<8xf32> to vector<8x1xf32>
    %45 = vector.broadcast %44 : vector<8x1xf32> to vector<8x8xf32>
    %46 = arith.subf %42, %45 : vector<8x8xf32>
    %47 = math.exp %46 : vector<8x8xf32>
    %cst_25 = arith.constant dense<0.000000e+00> : vector<8xf32>
    %48 = vector.multi_reduction <add>, %47, %cst_25 [1] : vector<8x8xf32> to vector<8xf32>
    %49 = vector.shape_cast %48 : vector<8xf32> to vector<8x1xf32>
    %50 = tpu.reciprocal %49 {approx = true} : vector<8x1xf32> -> vector<8x1xf32>
    %51 = vector.broadcast %50 : vector<8x1xf32> to vector<8x8xf32>
    %52 = arith.mulf %47, %51 : vector<8x8xf32>
    %cst_26 = arith.constant dense<0.000000e+00> : vector<8x8xf32>
    %53 = tpu.matmul %52, %41, %cst_26 {dimension_numbers = #tpu.dot_dimension_numbers<[1], [0], [0], [1], [0, 0, 1, 1], [], []>} : vector<8x8xf32>, vector<8x8xf32>, vector<8x8xf32> -> vector<8x8xf32>
    %54 = vector.extract_strided_slice %16 {offsets = [8, 0], sizes = [8, 32], strides = [1, 1]} : vector<32x32xf32> to vector<8x32xf32>
    %cst_27 = arith.constant dense<0.000000e+00> : vector<8x32xf32>
    %55 = tpu.matmul %53, %54, %cst_27 {dimension_numbers = #tpu.dot_dimension_numbers<[1], [0], [0], [1], [0, 0, 1, 1], [], []>} : vector<8x8xf32>, vector<8x32xf32>, vector<8x32xf32> -> vector<8x32xf32>
    %56 = arith.addf %38, %55 : vector<8x32xf32>
    %57 = vector.extract_strided_slice %17 {offsets = [0, 16], sizes = [8, 8], strides = [1, 1]} : vector<8x32xf32> to vector<8x8xf32>
    %58 = vector.extract_strided_slice %18 {offsets = [0, 16], sizes = [8, 8], strides = [1, 1]} : vector<8x32xf32> to vector<8x8xf32>
    %59 = vector.extract_strided_slice %19 {offsets = [0, 16], sizes = [8, 8], strides = [1, 1]} : vector<8x32xf32> to vector<8x8xf32>
    %cst_28 = arith.constant dense<0.000000e+00> : vector<8x8xf32>
    %60 = tpu.matmul %57, %58, %cst_28 {dimension_numbers = #tpu.dot_dimension_numbers<[1], [1], [0], [0], [0, 0, 1, 0], [], []>} : vector<8x8xf32>, vector<8x8xf32>, vector<8x8xf32> -> vector<8x8xf32>
    %cst_29 = arith.constant dense<0xFF800000> : vector<8xf32>
    %61 = vector.multi_reduction <maximumf>, %60, %cst_29 [1] : vector<8x8xf32> to vector<8xf32>
    %62 = vector.shape_cast %61 : vector<8xf32> to vector<8x1xf32>
    %63 = vector.broadcast %62 : vector<8x1xf32> to vector<8x8xf32>
    %64 = arith.subf %60, %63 : vector<8x8xf32>
    %65 = math.exp %64 : vector<8x8xf32>
    %cst_30 = arith.constant dense<0.000000e+00> : vector<8xf32>
    %66 = vector.multi_reduction <add>, %65, %cst_30 [1] : vector<8x8xf32> to vector<8xf32>
    %67 = vector.shape_cast %66 : vector<8xf32> to vector<8x1xf32>
    %68 = tpu.reciprocal %67 {approx = true} : vector<8x1xf32> -> vector<8x1xf32>
    %69 = vector.broadcast %68 : vector<8x1xf32> to vector<8x8xf32>
    %70 = arith.mulf %65, %69 : vector<8x8xf32>
    %cst_31 = arith.constant dense<0.000000e+00> : vector<8x8xf32>
    %71 = tpu.matmul %70, %59, %cst_31 {dimension_numbers = #tpu.dot_dimension_numbers<[1], [0], [0], [1], [0, 0, 1, 1], [], []>} : vector<8x8xf32>, vector<8x8xf32>, vector<8x8xf32> -> vector<8x8xf32>
    %72 = vector.extract_strided_slice %16 {offsets = [16, 0], sizes = [8, 32], strides = [1, 1]} : vector<32x32xf32> to vector<8x32xf32>
    %cst_32 = arith.constant dense<0.000000e+00> : vector<8x32xf32>
    %73 = tpu.matmul %71, %72, %cst_32 {dimension_numbers = #tpu.dot_dimension_numbers<[1], [0], [0], [1], [0, 0, 1, 1], [], []>} : vector<8x8xf32>, vector<8x32xf32>, vector<8x32xf32> -> vector<8x32xf32>
    %74 = arith.addf %56, %73 : vector<8x32xf32>
    %75 = vector.extract_strided_slice %17 {offsets = [0, 24], sizes = [8, 8], strides = [1, 1]} : vector<8x32xf32> to vector<8x8xf32>
    %76 = vector.extract_strided_slice %18 {offsets = [0, 24], sizes = [8, 8], strides = [1, 1]} : vector<8x32xf32> to vector<8x8xf32>
    %77 = vector.extract_strided_slice %19 {offsets = [0, 24], sizes = [8, 8], strides = [1, 1]} : vector<8x32xf32> to vector<8x8xf32>
    %cst_33 = arith.constant dense<0.000000e+00> : vector<8x8xf32>
    %78 = tpu.matmul %75, %76, %cst_33 {dimension_numbers = #tpu.dot_dimension_numbers<[1], [1], [0], [0], [0, 0, 1, 0], [], []>} : vector<8x8xf32>, vector<8x8xf32>, vector<8x8xf32> -> vector<8x8xf32>
    %cst_34 = arith.constant dense<0xFF800000> : vector<8xf32>
    %79 = vector.multi_reduction <maximumf>, %78, %cst_34 [1] : vector<8x8xf32> to vector<8xf32>
    %80 = vector.shape_cast %79 : vector<8xf32> to vector<8x1xf32>
    %81 = vector.broadcast %80 : vector<8x1xf32> to vector<8x8xf32>
    %82 = arith.subf %78, %81 : vector<8x8xf32>
    %83 = math.exp %82 : vector<8x8xf32>
    %cst_35 = arith.constant dense<0.000000e+00> : vector<8xf32>
    %84 = vector.multi_reduction <add>, %83, %cst_35 [1] : vector<8x8xf32> to vector<8xf32>
    %85 = vector.shape_cast %84 : vector<8xf32> to vector<8x1xf32>
    %86 = tpu.reciprocal %85 {approx = true} : vector<8x1xf32> -> vector<8x1xf32>
    %87 = vector.broadcast %86 : vector<8x1xf32> to vector<8x8xf32>
    %88 = arith.mulf %83, %87 : vector<8x8xf32>
    %cst_36 = arith.constant dense<0.000000e+00> : vector<8x8xf32>
    %89 = tpu.matmul %88, %77, %cst_36 {dimension_numbers = #tpu.dot_dimension_numbers<[1], [0], [0], [1], [0, 0, 1, 1], [], []>} : vector<8x8xf32>, vector<8x8xf32>, vector<8x8xf32> -> vector<8x8xf32>
    %90 = vector.extract_strided_slice %16 {offsets = [24, 0], sizes = [8, 32], strides = [1, 1]} : vector<32x32xf32> to vector<8x32xf32>
    %cst_37 = arith.constant dense<0.000000e+00> : vector<8x32xf32>
    %91 = tpu.matmul %89, %90, %cst_37 {dimension_numbers = #tpu.dot_dimension_numbers<[1], [0], [0], [1], [0, 0, 1, 1], [], []>} : vector<8x8xf32>, vector<8x32xf32>, vector<8x32xf32> -> vector<8x32xf32>
    %92 = arith.addf %74, %91 : vector<8x32xf32>
    %93 = vector.extract_strided_slice %5 {offsets = [8, 0], sizes = [8, 32], strides = [1, 1]} : vector<16x32xf32> to vector<8x32xf32>
    %94 = vector.extract_strided_slice %10 {offsets = [8, 0], sizes = [8, 32], strides = [1, 1]} : vector<16x32xf32> to vector<8x32xf32>
    %95 = vector.extract_strided_slice %15 {offsets = [8, 0], sizes = [8, 32], strides = [1, 1]} : vector<16x32xf32> to vector<8x32xf32>
    %cst_38 = arith.constant 0.000000e+00 : f32
    %96 = vector.broadcast %cst_38 : f32 to vector<8x32xf32>
    %97 = vector.extract_strided_slice %93 {offsets = [0, 0], sizes = [8, 8], strides = [1, 1]} : vector<8x32xf32> to vector<8x8xf32>
    %98 = vector.extract_strided_slice %94 {offsets = [0, 0], sizes = [8, 8], strides = [1, 1]} : vector<8x32xf32> to vector<8x8xf32>
    %99 = vector.extract_strided_slice %95 {offsets = [0, 0], sizes = [8, 8], strides = [1, 1]} : vector<8x32xf32> to vector<8x8xf32>
    %cst_39 = arith.constant dense<0.000000e+00> : vector<8x8xf32>
    %100 = tpu.matmul %97, %98, %cst_39 {dimension_numbers = #tpu.dot_dimension_numbers<[1], [1], [0], [0], [0, 0, 1, 0], [], []>} : vector<8x8xf32>, vector<8x8xf32>, vector<8x8xf32> -> vector<8x8xf32>
    %cst_40 = arith.constant dense<0xFF800000> : vector<8xf32>
    %101 = vector.multi_reduction <maximumf>, %100, %cst_40 [1] : vector<8x8xf32> to vector<8xf32>
    %102 = vector.shape_cast %101 : vector<8xf32> to vector<8x1xf32>
    %103 = vector.broadcast %102 : vector<8x1xf32> to vector<8x8xf32>
    %104 = arith.subf %100, %103 : vector<8x8xf32>
    %105 = math.exp %104 : vector<8x8xf32>
    %cst_41 = arith.constant dense<0.000000e+00> : vector<8xf32>
    %106 = vector.multi_reduction <add>, %105, %cst_41 [1] : vector<8x8xf32> to vector<8xf32>
    %107 = vector.shape_cast %106 : vector<8xf32> to vector<8x1xf32>
    %108 = tpu.reciprocal %107 {approx = true} : vector<8x1xf32> -> vector<8x1xf32>
    %109 = vector.broadcast %108 : vector<8x1xf32> to vector<8x8xf32>
    %110 = arith.mulf %105, %109 : vector<8x8xf32>
    %cst_42 = arith.constant dense<0.000000e+00> : vector<8x8xf32>
    %111 = tpu.matmul %110, %99, %cst_42 {dimension_numbers = #tpu.dot_dimension_numbers<[1], [0], [0], [1], [0, 0, 1, 1], [], []>} : vector<8x8xf32>, vector<8x8xf32>, vector<8x8xf32> -> vector<8x8xf32>
    %112 = vector.extract_strided_slice %16 {offsets = [0, 0], sizes = [8, 32], strides = [1, 1]} : vector<32x32xf32> to vector<8x32xf32>
    %cst_43 = arith.constant dense<0.000000e+00> : vector<8x32xf32>
    %113 = tpu.matmul %111, %112, %cst_43 {dimension_numbers = #tpu.dot_dimension_numbers<[1], [0], [0], [1], [0, 0, 1, 1], [], []>} : vector<8x8xf32>, vector<8x32xf32>, vector<8x32xf32> -> vector<8x32xf32>
    %114 = arith.addf %96, %113 : vector<8x32xf32>
    %115 = vector.extract_strided_slice %93 {offsets = [0, 8], sizes = [8, 8], strides = [1, 1]} : vector<8x32xf32> to vector<8x8xf32>
    %116 = vector.extract_strided_slice %94 {offsets = [0, 8], sizes = [8, 8], strides = [1, 1]} : vector<8x32xf32> to vector<8x8xf32>
    %117 = vector.extract_strided_slice %95 {offsets = [0, 8], sizes = [8, 8], strides = [1, 1]} : vector<8x32xf32> to vector<8x8xf32>
    %cst_44 = arith.constant dense<0.000000e+00> : vector<8x8xf32>
    %118 = tpu.matmul %115, %116, %cst_44 {dimension_numbers = #tpu.dot_dimension_numbers<[1], [1], [0], [0], [0, 0, 1, 0], [], []>} : vector<8x8xf32>, vector<8x8xf32>, vector<8x8xf32> -> vector<8x8xf32>
    %cst_45 = arith.constant dense<0xFF800000> : vector<8xf32>
    %119 = vector.multi_reduction <maximumf>, %118, %cst_45 [1] : vector<8x8xf32> to vector<8xf32>
    %120 = vector.shape_cast %119 : vector<8xf32> to vector<8x1xf32>
    %121 = vector.broadcast %120 : vector<8x1xf32> to vector<8x8xf32>
    %122 = arith.subf %118, %121 : vector<8x8xf32>
    %123 = math.exp %122 : vector<8x8xf32>
    %cst_46 = arith.constant dense<0.000000e+00> : vector<8xf32>
    %124 = vector.multi_reduction <add>, %123, %cst_46 [1] : vector<8x8xf32> to vector<8xf32>
    %125 = vector.shape_cast %124 : vector<8xf32> to vector<8x1xf32>
    %126 = tpu.reciprocal %125 {approx = true} : vector<8x1xf32> -> vector<8x1xf32>
    %127 = vector.broadcast %126 : vector<8x1xf32> to vector<8x8xf32>
    %128 = arith.mulf %123, %127 : vector<8x8xf32>
    %cst_47 = arith.constant dense<0.000000e+00> : vector<8x8xf32>
    %129 = tpu.matmul %128, %117, %cst_47 {dimension_numbers = #tpu.dot_dimension_numbers<[1], [0], [0], [1], [0, 0, 1, 1], [], []>} : vector<8x8xf32>, vector<8x8xf32>, vector<8x8xf32> -> vector<8x8xf32>
    %130 = vector.extract_strided_slice %16 {offsets = [8, 0], sizes = [8, 32], strides = [1, 1]} : vector<32x32xf32> to vector<8x32xf32>
    %cst_48 = arith.constant dense<0.000000e+00> : vector<8x32xf32>
    %131 = tpu.matmul %129, %130, %cst_48 {dimension_numbers = #tpu.dot_dimension_numbers<[1], [0], [0], [1], [0, 0, 1, 1], [], []>} : vector<8x8xf32>, vector<8x32xf32>, vector<8x32xf32> -> vector<8x32xf32>
    %132 = arith.addf %114, %131 : vector<8x32xf32>
    %133 = vector.extract_strided_slice %93 {offsets = [0, 16], sizes = [8, 8], strides = [1, 1]} : vector<8x32xf32> to vector<8x8xf32>
    %134 = vector.extract_strided_slice %94 {offsets = [0, 16], sizes = [8, 8], strides = [1, 1]} : vector<8x32xf32> to vector<8x8xf32>
    %135 = vector.extract_strided_slice %95 {offsets = [0, 16], sizes = [8, 8], strides = [1, 1]} : vector<8x32xf32> to vector<8x8xf32>
    %cst_49 = arith.constant dense<0.000000e+00> : vector<8x8xf32>
    %136 = tpu.matmul %133, %134, %cst_49 {dimension_numbers = #tpu.dot_dimension_numbers<[1], [1], [0], [0], [0, 0, 1, 0], [], []>} : vector<8x8xf32>, vector<8x8xf32>, vector<8x8xf32> -> vector<8x8xf32>
    %cst_50 = arith.constant dense<0xFF800000> : vector<8xf32>
    %137 = vector.multi_reduction <maximumf>, %136, %cst_50 [1] : vector<8x8xf32> to vector<8xf32>
    %138 = vector.shape_cast %137 : vector<8xf32> to vector<8x1xf32>
    %139 = vector.broadcast %138 : vector<8x1xf32> to vector<8x8xf32>
    %140 = arith.subf %136, %139 : vector<8x8xf32>
    %141 = math.exp %140 : vector<8x8xf32>
    %cst_51 = arith.constant dense<0.000000e+00> : vector<8xf32>
    %142 = vector.multi_reduction <add>, %141, %cst_51 [1] : vector<8x8xf32> to vector<8xf32>
    %143 = vector.shape_cast %142 : vector<8xf32> to vector<8x1xf32>
    %144 = tpu.reciprocal %143 {approx = true} : vector<8x1xf32> -> vector<8x1xf32>
    %145 = vector.broadcast %144 : vector<8x1xf32> to vector<8x8xf32>
    %146 = arith.mulf %141, %145 : vector<8x8xf32>
    %cst_52 = arith.constant dense<0.000000e+00> : vector<8x8xf32>
    %147 = tpu.matmul %146, %135, %cst_52 {dimension_numbers = #tpu.dot_dimension_numbers<[1], [0], [0], [1], [0, 0, 1, 1], [], []>} : vector<8x8xf32>, vector<8x8xf32>, vector<8x8xf32> -> vector<8x8xf32>
    %148 = vector.extract_strided_slice %16 {offsets = [16, 0], sizes = [8, 32], strides = [1, 1]} : vector<32x32xf32> to vector<8x32xf32>
    %cst_53 = arith.constant dense<0.000000e+00> : vector<8x32xf32>
    %149 = tpu.matmul %147, %148, %cst_53 {dimension_numbers = #tpu.dot_dimension_numbers<[1], [0], [0], [1], [0, 0, 1, 1], [], []>} : vector<8x8xf32>, vector<8x32xf32>, vector<8x32xf32> -> vector<8x32xf32>
    %150 = arith.addf %132, %149 : vector<8x32xf32>
    %151 = vector.extract_strided_slice %93 {offsets = [0, 24], sizes = [8, 8], strides = [1, 1]} : vector<8x32xf32> to vector<8x8xf32>
    %152 = vector.extract_strided_slice %94 {offsets = [0, 24], sizes = [8, 8], strides = [1, 1]} : vector<8x32xf32> to vector<8x8xf32>
    %153 = vector.extract_strided_slice %95 {offsets = [0, 24], sizes = [8, 8], strides = [1, 1]} : vector<8x32xf32> to vector<8x8xf32>
    %cst_54 = arith.constant dense<0.000000e+00> : vector<8x8xf32>
    %154 = tpu.matmul %151, %152, %cst_54 {dimension_numbers = #tpu.dot_dimension_numbers<[1], [1], [0], [0], [0, 0, 1, 0], [], []>} : vector<8x8xf32>, vector<8x8xf32>, vector<8x8xf32> -> vector<8x8xf32>
    %cst_55 = arith.constant dense<0xFF800000> : vector<8xf32>
    %155 = vector.multi_reduction <maximumf>, %154, %cst_55 [1] : vector<8x8xf32> to vector<8xf32>
    %156 = vector.shape_cast %155 : vector<8xf32> to vector<8x1xf32>
    %157 = vector.broadcast %156 : vector<8x1xf32> to vector<8x8xf32>
    %158 = arith.subf %154, %157 : vector<8x8xf32>
    %159 = math.exp %158 : vector<8x8xf32>
    %cst_56 = arith.constant dense<0.000000e+00> : vector<8xf32>
    %160 = vector.multi_reduction <add>, %159, %cst_56 [1] : vector<8x8xf32> to vector<8xf32>
    %161 = vector.shape_cast %160 : vector<8xf32> to vector<8x1xf32>
    %162 = tpu.reciprocal %161 {approx = true} : vector<8x1xf32> -> vector<8x1xf32>
    %163 = vector.broadcast %162 : vector<8x1xf32> to vector<8x8xf32>
    %164 = arith.mulf %159, %163 : vector<8x8xf32>
    %cst_57 = arith.constant dense<0.000000e+00> : vector<8x8xf32>
    %165 = tpu.matmul %164, %153, %cst_57 {dimension_numbers = #tpu.dot_dimension_numbers<[1], [0], [0], [1], [0, 0, 1, 1], [], []>} : vector<8x8xf32>, vector<8x8xf32>, vector<8x8xf32> -> vector<8x8xf32>
    %166 = vector.extract_strided_slice %16 {offsets = [24, 0], sizes = [8, 32], strides = [1, 1]} : vector<32x32xf32> to vector<8x32xf32>
    %cst_58 = arith.constant dense<0.000000e+00> : vector<8x32xf32>
    %167 = tpu.matmul %165, %166, %cst_58 {dimension_numbers = #tpu.dot_dimension_numbers<[1], [0], [0], [1], [0, 0, 1, 1], [], []>} : vector<8x8xf32>, vector<8x32xf32>, vector<8x32xf32> -> vector<8x32xf32>
    %168 = arith.addf %150, %167 : vector<8x32xf32>
    %169 = tpu.concatenate %92, %168 in 0 : vector<8x32xf32>, vector<8x32xf32> -> vector<16x32xf32>
    %c0_59 = arith.constant 0 : index
    %c0_60 = arith.constant 0 : index
    %170 = vector.load %arg9[%c0_59, %c0_60] : memref<1x32xf32, #tpu.memory_space<vmem>>, vector<1x32xf32>
    %171 = vector.broadcast %170 : vector<1x32xf32> to vector<16x32xf32>
    %172 = arith.addf %169, %171 : vector<16x32xf32>
    %173 = arith.addf %0, %172 : vector<16x32xf32>
    %c0_61 = arith.constant 0 : index
    %c0_62 = arith.constant 0 : index
    %174 = vector.load %arg10[%c0_61, %c0_62] : memref<1x32xf32, #tpu.memory_space<vmem>>, vector<1x32xf32>
    %c0_63 = arith.constant 0 : index
    %c0_64 = arith.constant 0 : index
    %175 = vector.load %arg11[%c0_63, %c0_64] : memref<1x32xf32, #tpu.memory_space<vmem>>, vector<1x32xf32>
    %cst_65 = arith.constant dense<0.000000e+00> : vector<16xf32>
    %176 = vector.multi_reduction <add>, %173, %cst_65 [1] : vector<16x32xf32> to vector<16xf32>
    %177 = vector.shape_cast %176 : vector<16xf32> to vector<16x1xf32>
    %cst_66 = arith.constant 3.200000e+01 : f32
    %178 = vector.broadcast %cst_66 : f32 to vector<16x1xf32>
    %179 = arith.divf %177, %178 : vector<16x1xf32>
    %180 = vector.broadcast %179 : vector<16x1xf32> to vector<16x32xf32>
    %181 = arith.subf %173, %180 : vector<16x32xf32>
    %182 = arith.mulf %181, %181 : vector<16x32xf32>
    %cst_67 = arith.constant dense<0.000000e+00> : vector<16xf32>
    %183 = vector.multi_reduction <add>, %182, %cst_67 [1] : vector<16x32xf32> to vector<16xf32>
    %184 = vector.shape_cast %183 : vector<16xf32> to vector<16x1xf32>
    %cst_68 = arith.constant 3.200000e+01 : f32
    %185 = vector.broadcast %cst_68 : f32 to vector<16x1xf32>
    %186 = arith.divf %184, %185 : vector<16x1xf32>
    %cst_69 = arith.constant 9.99999974E-6 : f32
    %187 = vector.broadcast %cst_69 : f32 to vector<16x1xf32>
    %188 = arith.addf %186, %187 : vector<16x1xf32>
    %189 = math.rsqrt %188 : vector<16x1xf32>
    %190 = vector.broadcast %189 : vector<16x1xf32> to vector<16x32xf32>
    %191 = arith.mulf %181, %190 : vector<16x32xf32>
    %192 = vector.broadcast %174 : vector<1x32xf32> to vector<16x32xf32>
    %193 = arith.mulf %191, %192 : vector<16x32xf32>
    %194 = vector.broadcast %175 : vector<1x32xf32> to vector<16x32xf32>
    %195 = arith.addf %193, %194 : vector<16x32xf32>
    %c0_70 = arith.constant 0 : index
    %c0_71 = arith.constant 0 : index
    %196 = vector.load %arg12[%c0_70, %c0_71] : memref<32x64xf32, #tpu.memory_space<vmem>>, vector<32x64xf32>
    %cst_72 = arith.constant dense<0.000000e+00> : vector<16x64xf32>
    %197 = tpu.matmul %195, %196, %cst_72 {dimension_numbers = #tpu.dot_dimension_numbers<[1], [0], [0], [1], [0, 0, 1, 1], [], []>} : vector<16x32xf32>, vector<32x64xf32>, vector<16x64xf32> -> vector<16x64xf32>
    %c0_73 = arith.constant 0 : index
    %c0_74 = arith.constant 0 : index
    %198 = vector.load %arg13[%c0_73, %c0_74] : memref<1x64xf32, #tpu.memory_space<vmem>>, vector<1x64xf32>
    %199 = vector.broadcast %198 : vector<1x64xf32> to vector<16x64xf32>
    %200 = arith.addf %197, %199 : vector<16x64xf32>
    %201 = arith.negf %200 : vector<16x64xf32>
    %202 = math.exp %201 : vector<16x64xf32>
    %cst_75 = arith.constant 1.000000e+00 : f32
    %203 = vector.broadcast %cst_75 : f32 to vector<16x64xf32>
    %204 = arith.addf %203, %202 : vector<16x64xf32>
    %205 = arith.divf %203, %204 : vector<16x64xf32>
    %206 = arith.mulf %200, %205 : vector<16x64xf32>
    %c0_76 = arith.constant 0 : index
    %c0_77 = arith.constant 0 : index
    %207 = vector.load %arg14[%c0_76, %c0_77] : memref<64x32xf32, #tpu.memory_space<vmem>>, vector<64x32xf32>
    %cst_78 = arith.constant dense<0.000000e+00> : vector<16x32xf32>
    %208 = tpu.matmul %206, %207, %cst_78 {dimension_numbers = #tpu.dot_dimension_numbers<[1], [0], [0], [1], [0, 0, 1, 1], [], []>} : vector<16x64xf32>, vector<64x32xf32>, vector<16x32xf32> -> vector<16x32xf32>
    %c0_79 = arith.constant 0 : index
    %c0_80 = arith.constant 0 : index
    %209 = vector.load %arg15[%c0_79, %c0_80] : memref<1x32xf32, #tpu.memory_space<vmem>>, vector<1x32xf32>
    %210 = vector.broadcast %209 : vector<1x32xf32> to vector<16x32xf32>
    %211 = arith.addf %208, %210 : vector<16x32xf32>
    %212 = arith.addf %195, %211 : vector<16x32xf32>
    %c0_81 = arith.constant 0 : index
    %c0_82 = arith.constant 0 : index
    %213 = vector.load %arg16[%c0_81, %c0_82] : memref<1x32xf32, #tpu.memory_space<vmem>>, vector<1x32xf32>
    %c0_83 = arith.constant 0 : index
    %c0_84 = arith.constant 0 : index
    %214 = vector.load %arg17[%c0_83, %c0_84] : memref<1x32xf32, #tpu.memory_space<vmem>>, vector<1x32xf32>
    %cst_85 = arith.constant dense<0.000000e+00> : vector<16xf32>
    %215 = vector.multi_reduction <add>, %212, %cst_85 [1] : vector<16x32xf32> to vector<16xf32>
    %216 = vector.shape_cast %215 : vector<16xf32> to vector<16x1xf32>
    %cst_86 = arith.constant 3.200000e+01 : f32
    %217 = vector.broadcast %cst_86 : f32 to vector<16x1xf32>
    %218 = arith.divf %216, %217 : vector<16x1xf32>
    %219 = vector.broadcast %218 : vector<16x1xf32> to vector<16x32xf32>
    %220 = arith.subf %212, %219 : vector<16x32xf32>
    %221 = arith.mulf %220, %220 : vector<16x32xf32>
    %cst_87 = arith.constant dense<0.000000e+00> : vector<16xf32>
    %222 = vector.multi_reduction <add>, %221, %cst_87 [1] : vector<16x32xf32> to vector<16xf32>
    %223 = vector.shape_cast %222 : vector<16xf32> to vector<16x1xf32>
    %cst_88 = arith.constant 3.200000e+01 : f32
    %224 = vector.broadcast %cst_88 : f32 to vector<16x1xf32>
    %225 = arith.divf %223, %224 : vector<16x1xf32>
    %cst_89 = arith.constant 9.99999974E-6 : f32
    %226 = vector.broadcast %cst_89 : f32 to vector<16x1xf32>
    %227 = arith.addf %225, %226 : vector<16x1xf32>
    %228 = math.rsqrt %227 : vector<16x1xf32>
    %229 = vector.broadcast %228 : vector<16x1xf32> to vector<16x32xf32>
    %230 = arith.mulf %220, %229 : vector<16x32xf32>
    %231 = vector.broadcast %213 : vector<1x32xf32> to vector<16x32xf32>
    %232 = arith.mulf %230, %231 : vector<16x32xf32>
    %233 = vector.broadcast %214 : vector<1x32xf32> to vector<16x32xf32>
    %234 = arith.addf %232, %233 : vector<16x32xf32>
    %c0_90 = arith.constant 0 : index
    %c0_91 = arith.constant 0 : index
    %235 = vector.load %arg18[%c0_90, %c0_91] : memref<16x32xf32, #tpu.memory_space<vmem>>, vector<16x32xf32>
    tpu.vector_store %arg18[%c0_90, %c0_91], %234 {strides = array<i32>} : memref<16x32xf32, #tpu.memory_space<vmem>>, vector<16x32xf32>,
    return
  }
  func.func @transform_0(%arg0: i32) -> (i32, i32) {
    %c0_i32 = arith.constant 0 : i32
    %c0_i32_0 = arith.constant 0 : i32
    %c0_i32_1 = arith.constant 0 : i32
    return %c0_i32, %c0_i32_0 : i32, i32
  }
  func.func @transform_1(%arg0: i32) -> (i32, i32) {
    %c0_i32 = arith.constant 0 : i32
    %c0_i32_0 = arith.constant 0 : i32
    %c0_i32_1 = arith.constant 0 : i32
    return %c0_i32, %c0_i32_0 : i32, i32
  }
  func.func @transform_2(%arg0: i32) -> (i32, i32) {
    %c0_i32 = arith.constant 0 : i32
    %c0_i32_0 = arith.constant 0 : i32
    %c0_i32_1 = arith.constant 0 : i32
    return %c0_i32, %c0_i32_0 : i32, i32
  }
  func.func @transform_3(%arg0: i32) -> (i32, i32) {
    %c0_i32 = arith.constant 0 : i32
    %c0_i32_0 = arith.constant 0 : i32
    %c0_i32_1 = arith.constant 0 : i32
    return %c0_i32, %c0_i32_0 : i32, i32
  }
  func.func @transform_4(%arg0: i32) -> (i32, i32) {
    %c0_i32 = arith.constant 0 : i32
    %c0_i32_0 = arith.constant 0 : i32
    %c0_i32_1 = arith.constant 0 : i32
    return %c0_i32, %c0_i32_0 : i32, i32
  }
  func.func @transform_5(%arg0: i32) -> (i32, i32) {
    %c0_i32 = arith.constant 0 : i32
    %c0_i32_0 = arith.constant 0 : i32
    %c0_i32_1 = arith.constant 0 : i32
    return %c0_i32, %c0_i32_0 : i32, i32
  }
  func.func @transform_6(%arg0: i32) -> (i32, i32) {
    %c0_i32 = arith.constant 0 : i32
    %c0_i32_0 = arith.constant 0 : i32
    %c0_i32_1 = arith.constant 0 : i32
    return %c0_i32, %c0_i32_0 : i32, i32
  }
  func.func @transform_7(%arg0: i32) -> (i32, i32) {
    %c0_i32 = arith.constant 0 : i32
    %c0_i32_0 = arith.constant 0 : i32
    %c0_i32_1 = arith.constant 0 : i32
    return %c0_i32, %c0_i32_0 : i32, i32
  }
  func.func @transform_8(%arg0: i32) -> (i32, i32) {
    %c0_i32 = arith.constant 0 : i32
    %c0_i32_0 = arith.constant 0 : i32
    %c0_i32_1 = arith.constant 0 : i32
    return %c0_i32, %c0_i32_0 : i32, i32
  }
  func.func @transform_9(%arg0: i32) -> (i32, i32) {
    %c0_i32 = arith.constant 0 : i32
    %c0_i32_0 = arith.constant 0 : i32
    %c0_i32_1 = arith.constant 0 : i32
    return %c0_i32, %c0_i32_0 : i32, i32
  }
  func.func @transform_10(%arg0: i32) -> (i32, i32) {
    %c0_i32 = arith.constant 0 : i32
    %c0_i32_0 = arith.constant 0 : i32
    %c0_i32_1 = arith.constant 0 : i32
    return %c0_i32, %c0_i32_0 : i32, i32
  }
  func.func @transform_11(%arg0: i32) -> (i32, i32) {
    %c0_i32 = arith.constant 0 : i32
    %c0_i32_0 = arith.constant 0 : i32
    %c0_i32_1 = arith.constant 0 : i32
    return %c0_i32, %c0_i32_0 : i32, i32
  }
  func.func @transform_12(%arg0: i32) -> (i32, i32) {
    %c0_i32 = arith.constant 0 : i32
    %c0_i32_0 = arith.constant 0 : i32
    %c0_i32_1 = arith.constant 0 : i32
    return %c0_i32, %c0_i32_0 : i32, i32
  }
  func.func @transform_13(%arg0: i32) -> (i32, i32) {
    %c0_i32 = arith.constant 0 : i32
    %c0_i32_0 = arith.constant 0 : i32
    %c0_i32_1 = arith.constant 0 : i32
    return %c0_i32, %c0_i32_0 : i32, i32
  }
  func.func @transform_14(%arg0: i32) -> (i32, i32) {
    %c0_i32 = arith.constant 0 : i32
    %c0_i32_0 = arith.constant 0 : i32
    %c0_i32_1 = arith.constant 0 : i32
    return %c0_i32, %c0_i32_0 : i32, i32
  }
  func.func @transform_15(%arg0: i32) -> (i32, i32) {
    %c0_i32 = arith.constant 0 : i32
    %c0_i32_0 = arith.constant 0 : i32
    %c0_i32_1 = arith.constant 0 : i32
    return %c0_i32, %c0_i32_0 : i32, i32
  }
  func.func @transform_16(%arg0: i32) -> (i32, i32) {
    %c0_i32 = arith.constant 0 : i32
    %c0_i32_0 = arith.constant 0 : i32
    %c0_i32_1 = arith.constant 0 : i32
    return %c0_i32, %c0_i32_0 : i32, i32
  }
  func.func @transform_17(%arg0: i32) -> (i32, i32) {
    %c0_i32 = arith.constant 0 : i32
    %c0_i32_0 = arith.constant 0 : i32
    %c0_i32_1 = arith.constant 0 : i32
    return %c0_i32, %c0_i32_0 : i32, i32
  }
}

</mosaic_0001>

<bundles_post_ra>
// kernel: tpu_custom_call.1
= control target key start
LH: loop header
LB: loop body
LE: loop exit
PB: predicated region body
PF: predicated region fallthrough
CT: control target
= control target key end

     0   :  { %s3594_s0 = inlined_call_operand.hbm [shape: f32[16,32], index: 0, kind: input, shape index: {}]   ;;  %s3595_s1 = inlined_call_operand.vmem [shape: f32[32,32], index: 1, kind: input, shape index: {}]   ;;  %s3596_s2 = inlined_call_operand.vmem [shape: f32[1,32], index: 2, kind: input, shape index: {}]   ;;  %s3597_s3 = inlined_call_operand.vmem [shape: f32[32,32], index: 3, kind: input, shape index: {}]   ;;  %s3598_s4 = inlined_call_operand.vmem [shape: f32[1,32], index: 4, kind: input, shape index: {}]   ;;  %s3599_s5 = inlined_call_operand.vmem [shape: f32[32,32], index: 5, kind: input, shape index: {}]   ;;  %s3600_s6 = inlined_call_operand.vmem [shape: f32[1,32], index: 6, kind: input, shape index: {}]   ;;  %s3601_s7 = inlined_call_operand.hbm [shape: f32[32,32], index: 7, kind: input, shape index: {}]   ;;  %s3602_s8 = inlined_call_operand.vmem [shape: f32[1,32], index: 8, kind: input, shape index: {}]   ;;  %s3603_s9 = inlined_call_operand.vmem [shape: f32[1,32], index: 9, kind: input, shape index: {}]   ;;  %s3604_s10 = inlined_call_operand.vmem [shape: f32[1,32], index: 10, kind: input, shape index: {}]   ;;  %s3605_s11 = inlined_call_operand.hbm [shape: f32[32,64], index: 11, kind: input, shape index: {}]   ;;  %s3606_s12 = inlined_call_operand.vmem [shape: f32[1,64], index: 12, kind: input, shape index: {}]   ;;  %s3607_s13 = inlined_call_operand.vmem [shape: f32[64,32], index: 13, kind: input, shape index: {}]   ;;  %s3608_s14 = inlined_call_operand.vmem [shape: f32[1,32], index: 14, kind: input, shape index: {}]   ;;  %s3609_s15 = inlined_call_operand.vmem [shape: f32[1,32], index: 15, kind: input, shape index: {}]   ;;  %s3610_s16 = inlined_call_operand.vmem [shape: f32[1,32], index: 16, kind: input, shape index: {}]   ;;  %s3611_s17 = inlined_call_operand.hbm [shape: f32[16,32], index: 17, kind: output, shape index: {}]  }
   0x1   :  { %3614 = sst [smem:[#allocation12_spill]] %s3594_s0 }
   0x2   :  { %3615 = sst [smem:[#allocation13_spill]] %s3595_s1 }
   0x3   :  { %22 = vsyncpa [#allocation3], 0 }
   0x4   :  { %23 = vsyncpa [#allocation6], 0 }
   0x5   :  { %24 = vsyncpa [#allocation4], 0  ;;  %s3115_s24 = smov [#allocation5]   ;;  %s3116_s26 = smov [#allocation2]  }
   0x6   :  { %s54_s25 = sshll.u32 %s3115_s24, 4  ;;  %s30_s27 = sshll.u32 %s3116_s26, 4  ;;  %s55_s25 = int_to_ptr.vmem [resolvable:$true] %s54_s25  ;;  %s3216_s27 = int_to_ptr.vmem [resolvable:$true] %s30_s27 }
   0x7   :  { %s3021_s0 = scalar_lea.hbm %s3601_s7, 512 }
   0x8   :  { %p3022_p0 = scmp.ne.s32.totalorder %s3601_s7, %s3021_s0  ;;  %p3025_p1 = scmp.lt.u32.totalorder %s3021_s0, %s3601_s7 }
   0xa   :  { %p3027_p2 = pnand %p3025_p1, %p3022_p0 }
   0xc   :  { %3030 = shalt.err (!%p3027_p2)
}
   0xd   :  { %s3031_s20 = scalar_lea.vmem %s55_s25, 512  ;;  %p3036_p4 = scmp.lt.s32.totalorder %s55_s25, %s55_s25 }
   0xe   :  { %p3032_p3 = scmp.ne.s32.totalorder %s55_s25, %s3031_s20  ;;  %p3037_p5 = scmp.lt.s32.totalorder %s3031_s20, %s3031_s20 }
  0x10   :  { %p3038_p6 = por %p3037_p5, %p3036_p4 }
  0x12   :  { %p3039_p7 = pnand %p3038_p6, %p3032_p3 }
  0x14   :  { %3042 = shalt.err (!%p3039_p7)
}
  0x15   :  { %s3117_s21 = smov 128   ;;  %s3118_s22 = smov 8  }
  0x16   :  { %60 = dma.hbm_to_vmem [thread:$0]  %s3601_s7, 512, %s55_s25, [#allocation6], %s3117_s21, %s3117_s21, %s3118_s22  }
  0x17   :  { %s3616_s29 = sld [smem:[#allocation12_spill]] }
  0x1d   :  { %s3043_s0 = scalar_lea.hbm %s3616_s29, 256 }
  0x1e   :  { %p3044_p8 = scmp.ne.s32.totalorder %s3616_s29, %s3043_s0  ;;  %p3047_p9 = scmp.lt.u32.totalorder %s3043_s0, %s3616_s29 }
  0x20   :  { %p3049_p10 = pnand %p3047_p9, %p3044_p8 }
  0x22   :  { %3052 = shalt.err (!%p3049_p10)
}
  0x23   :  { %s3053_s20 = scalar_lea.vmem %s3216_s27, 256  ;;  %p3058_p12 = scmp.lt.s32.totalorder %s3216_s27, %s3216_s27 }
  0x24   :  { %p3054_p11 = scmp.ne.s32.totalorder %s3216_s27, %s3053_s20  ;;  %p3059_p13 = scmp.lt.s32.totalorder %s3053_s20, %s3053_s20 }
  0x26   :  { %p3060_p0 = por %p3059_p13, %p3058_p12 }
  0x28   :  { %p3061_p1 = pnand %p3060_p0, %p3054_p11 }
  0x2a   :  { %3064 = shalt.err (!%p3061_p1)
}
  0x2b   :  { %36 = dma.hbm_to_vmem [thread:$0]  %s3616_s29, 256, %s3216_s27, [#allocation3], %s3117_s21, %s3117_s21, %s3118_s22  }
  0x2c   :  { %s3119_s23 = smov [#allocation7]   ;;  %s3065_s0 = scalar_lea.hbm %s3605_s11, 512 }
  0x2d   :  { %s72_s24 = sshll.u32 %s3119_s23, 4  ;;  %p3066_p2 = scmp.ne.s32.totalorder %s3605_s11, %s3065_s0  ;;  %s73_s24 = int_to_ptr.vmem [resolvable:$true] %s72_s24 }
  0x2e   :  { %p3069_p3 = scmp.lt.u32.totalorder %s3065_s0, %s3605_s11 }
  0x30   :  { %p3071_p4 = pnand %p3069_p3, %p3066_p2 }
  0x32   :  { %3074 = shalt.err (!%p3071_p4)
}
  0x33   :  { %s3075_s20 = scalar_lea.vmem %s73_s24, 512  ;;  %p3080_p6 = scmp.lt.s32.totalorder %s73_s24, %s73_s24 }
  0x34   :  { %p3076_p5 = scmp.ne.s32.totalorder %s73_s24, %s3075_s20  ;;  %p3081_p7 = scmp.lt.s32.totalorder %s3075_s20, %s3075_s20 }
  0x36   :  { %p3082_p8 = por %p3081_p7, %p3080_p6 }
  0x38   :  { %p3083_p9 = pnand %p3082_p8, %p3076_p5 }
  0x3a   :  { %3086 = shalt.err (!%p3083_p9)
}
  0x3b   :  { %78 = dma.hbm_to_vmem [thread:$0]  %s3605_s11, 512, %s73_s24, [#allocation6], %s3117_s21, %s3117_s21, %s3118_s22  }
  0x3c   :  { %3109 = dma.done.wait [#allocation3], 256  }
  0x3d   :  { %3110 = vsyncadd [#allocation3], 4294967040 }
  0x3e   :  { %3111 = dma.done.wait [#allocation6], 1024  }
  0x3f   :  { %3112 = vsyncadd [#allocation6], 4294966272  ;;  %v193_v0 = vld [vmem:[%s3597_s3] sm:$0xff]  ;;  %v194_v1 = vld [vmem:[%s3597_s3 + $0x8] sm:$0xff]  ;;  %s3617_s30 = sld [smem:[#allocation13_spill]]  ;;  %vm111_vm0 = vcmask 261120  }
  0x40   :  { %v2922_v3 = vpack.c.bf16 %v194_v1, %v193_v0  ;;  %v195_v5 = vld [vmem:[%s3597_s3 + $0x10] sm:$0xff]  ;;  %v196_v6 = vld [vmem:[%s3597_s3 + $0x18] sm:$0xff]  ;;  %v3292_v11 = vld [vmem:[#allocation2] sm:$0xff]  ;;  %v3120_v20 = vmov 0.0   ;;  %vm3121_vm1 = vmmov 0   ;;  %vm369_vm2 = vcmask 64512  }
  0x41   :  { %v2926_v8 = vpack.c.bf16 %v196_v6, %v195_v5  ;;  %2750 = vmatprep.mubr.msk.f32.mxu1 %vm111_vm0, %v3292_v11  ;;  %v279_v13 = vld [vmem:[%s3599_s5] sm:$0xff]  ;;  %v280_v14 = vld [vmem:[%s3599_s5 + $0x8] sm:$0xff]  ;;  %2739 = vmatprep.mubr.msk.f32.mxu0 %vm111_vm0, %v3292_v11  ;;  %v281_v16 = vld [vmem:[%s3599_s5 + $0x10] sm:$0xff]  ;;  %s3122_s20 = smov 120   ;;  %s3124_s27 = smov 104   ;;  %vm2447_vm3 = vcmask 523264  }
  0x42   :  { %2923 = vmatprep.subr.bf16.mxu1 %v2922_v3  ;;  %v2930_v15 = vpack.c.bf16 %v280_v14, %v279_v13  ;;  %v282_v17 = vld [vmem:[%s3599_s5 + $0x18] sm:$0xff]  ;;  %v3310_v18 = vld [vmem:[#allocation2 + $0x8] sm:$0xff]  ;;  %v2598_v21 = vld [vmem:[%s3598_s4] ss:$0 sm:$0xff]  ;;  %s3125_s23 = smov [#allocation8]  }
  0x43   :  { %2925 = vmatpush3.bf16.msra.mxu1 %v2922_v3  ;;  %v2934_v19 = vpack.c.bf16 %v282_v17, %v281_v16  ;;  %v2595_v22 = vld [vmem:[%s3596_s2] ss:$0 sm:$0xff]  ;;  %v3376_v57 = vld [vmem:[#allocation5 + $0x8] sm:$0xff]  ;;  %v3381_v62 = vld [vmem:[#allocation5] sm:$0xff]  ;;  %s2582_s26 = sshll.u32 %s3125_s23, 4  ;;  %s2583_s26 = int_to_ptr.vmem [resolvable:$true] %s2582_s26 }
  0x44   :  { %2927 = vmatprep.subr.bf16.mxu1 %v2926_v8  ;;  %v2601_v31 = vld [vmem:[%s3600_s6] ss:$0 sm:$0xff]  ;;  %s3123_s6 = smov 112   ;;  %p3092_p11 = scmp.lt.s32.totalorder %s2583_s26, %s2583_s26 }
  0x45   :  { %v100_v2 = vld [vmem:[%s3617_s30] sm:$0xff]  ;;  %v101_v4 = vld [vmem:[%s3617_s30 + $0x8] sm:$0xff]  ;;  %v102_v9 = vld [vmem:[%s3617_s30 + $0x10] sm:$0xff] }
  0x46   :  { %v2914_v7 = vpack.c.bf16 %v101_v4, %v100_v2  ;;  %v103_v10 = vld [vmem:[%s3617_s30 + $0x18] sm:$0xff] }
  0x47   :  { %v2918_v12 = vpack.c.bf16 %v103_v10, %v102_v9  ;;  %2929 = vmatpush3.bf16.msra.mxu1 %v2926_v8 }
  0x48   :  { %2915 = vmatprep.subr.bf16.mxu0 %v2914_v7  ;;  %2769 = vmatprep.subr.mxu1 %v3120_v20 }
  0x49   :  { %2917 = vmatpush3.bf16.msra.mxu0 %v2914_v7 }
  0x4a   :  { %2919 = vmatprep.subr.bf16.mxu0 %v2918_v12  ;;  %2751 = vmatmul.mubr.msk.f32.vlgmr.msra.gmra.mrb[0].mxu1 %vm111_vm0, %v3310_v18 }
  0x4b   :  { %2771 = vmatprep.mubr.msk.f32.mxu1 %vm3121_vm1, %v3120_v20 }
  0x4d   :  { %2921 = vmatpush3.bf16.msra.mxu0 %v2918_v12 }
  0x4e   :  { %2931 = vmatprep.subr.bf16.mxu0 %v2930_v15 }
  0x50   :  { %2740 = vmatmul.mubr.msk.f32.vlgmr.msra.gmra.mrb[0].mxu0 %vm111_vm0, %v3310_v18 }
  0x51   :  { %2933 = vmatpush3.bf16.msra.mxu0 %v2930_v15  ;;  %2761 = vmatprep.mubr.msk.f32.mxu0 %vm111_vm0, %v3292_v11 }
  0x52   :  { %2935 = vmatprep.subr.bf16.mxu0 %v2934_v19 }
  0x55   :  { %2937 = vmatpush3.bf16.msra.mxu0 %v2934_v19 }
  0x56   :  { %2764 = vmatprep.subr.mxu0 %v3120_v20 }
  0x58   :  { %2762 = vmatmul.mubr.msk.f32.vlgmr.msra.gmra.mrb[2].mxu0 %vm111_vm0, %v3310_v18 }
  0x59   :  { %2766 = vmatprep.mubr.msk.f32.mxu0 %vm3121_vm1, %v3120_v20 }
 0x11d   :  { %v2752_v23 = vpop.f32.mrb[0].mxu1 }
 0x11e   :  { %v3332_v24 = vadd.f32 %v2752_v23, %v2598_v21  ;;  %v270_v25 = vpop.f32.mrb[1].mxu1 }
 0x11f   :  { %v271_v27 = vadd.f32 %v2598_v21, %v270_v25 }
 0x121   :  { %532 = vrot.lane.b32.xlu0 %v271_v27, %s3122_s20  ;;  %2765 = vmatpush3.xpose.msk.msra.mxu0 %vm369_vm2, %v271_v27 }
 0x122   :  { %2774 = vmatprep.subr.mxu0 %v3120_v20 }
 0x123   :  { %v2741_v26 = vpop.f32.mrb[0].mxu0 }
 0x124   :  { %v3334_v28 = vadd.f32 %v2741_v26, %v2595_v22  ;;  %v184_v29 = vpop.f32.mrb[1].mxu0 }
 0x125   :  { %v3336_v30 = vadd.f32 %v2595_v22, %v184_v29  ;;  %v3408_v22 = vld [vmem:[#allocation5 + $0x10] sm:$0xff] }
 0x127   :  { %2767 = vmatmul.mubr.msk.f32.vlgmr.msra.gmra.mrb[4].mxu0 %vm369_vm2, %v3336_v30  ;;  %530 = vrot.lane.b32.xlu0 %v3336_v30, %s3122_s20 }
 0x128   :  { %2776 = vmatprep.mubr.msk.f32.mxu0 %vm3121_vm1, %v3120_v20 }
 0x12b   :  { %v2763_v32 = vpop.f32.mrb[2].mxu0 }
 0x12c   :  { %v3350_v33 = vadd.f32 %v2763_v32, %v2601_v31  ;;  %v356_v34 = vpop.f32.mrb[3].mxu0 }
 0x12d   :  { %v3352_v35 = vadd.f32 %v2601_v31, %v356_v34 }
 0x12f   :  { %2770 = vmatpush3.msra.mxu1 %v3352_v35 }
 0x130   :  { %2779 = vmatprep.subr.mxu1 %v3120_v20 }
 0x193   :  { %v533_v36 = vpop.permute.xlu0 %532 }
 0x194   :  { %2775 = vmatpush3.xpose.msk.msra.mxu0 %vm369_vm2, %v533_v36 }
 0x195   :  { %2784 = vmatprep.subr.mxu0 %v3120_v20 }
 0x199   :  { %v531_v37 = vpop.permute.xlu0 %530 }
 0x19a   :  { %2777 = vmatmul.mubr.msk.f32.vlgmr.msra.gmra.mrb[6].mxu0 %vm369_vm2, %v531_v37 }
 0x19b   :  { %2786 = vmatprep.mubr.msk.f32.mxu0 %vm3121_vm1, %v3120_v20  ;;  %2785 = vmatpush3.msra.mxu0 %v3376_v57 }
 0x19c   :  { %2794 = vmatprep.subr.mxu0 %v3120_v20 }
 0x1fa   :  { %v442_v38 = vpop.f32.mrb[4].mxu0 }
 0x1fb   :  { %v2768_v39 = vpop.f32.mrb[5].mxu0  ;;  %v446_v40 = vsel %vm369_vm2, %v442_v38, -inf }
 0x1fc   :  { %447 = vmax.xlane.f32.xlu1 %v446_v40 }
 0x26d   :  { %v604_v41 = vpop.f32.mrb[6].mxu0 }
 0x26e   :  { %v2778_v42 = vpop.f32.mrb[7].mxu0  ;;  %v608_v43 = vsel %vm369_vm2, %v604_v41, -inf }
 0x26f   :  { %609 = vmax.xlane.f32.xlu1 %v608_v43  ;;  %v3428_v42 = vld [vmem:[#allocation5 + $0x18] sm:$0xff] }
 0x289   :  { %v448_v44 = vpop.xlane.xlu1 %447 }
 0x28a   :  { %v449_v45 = vsub.f32 %v442_v38, %v448_v44 }
 0x28c   :  { %v450_v46 = vmul.f32 1.442695, %v449_v45 }
 0x28e   :  { %2973 = vpow2.f32 %v450_v46 }
 0x298   :  { %v2974_v47 = vpop.eup %2973 }
 0x299   :  { %v452_v48 = vsel %vm369_vm2, %v2974_v47, 0.0 }
 0x29a   :  { %453 = vadd.xlane.f32.xlu0 %v452_v48 }
 0x2b0   :  { %931 = vrot.lane.b32.xlu0 %v3352_v35, %s3123_s6 }
 0x2b4   :  { %1083 = vrot.lane.b32.xlu0 %v271_v27, %s3124_s27 }
 0x2fc   :  { %v610_v49 = vpop.xlane.xlu1 %609 }
 0x2fd   :  { %v611_v50 = vsub.f32 %v604_v41, %v610_v49 }
 0x2ff   :  { %v612_v51 = vmul.f32 1.442695, %v611_v50 }
 0x301   :  { %2975 = vpow2.f32 %v612_v51 }
 0x30b   :  { %v2976_v52 = vpop.eup %2975 }
 0x30c   :  { %v614_v53 = vsel %vm369_vm2, %v2976_v52, 0.0 }
 0x30d   :  { %615 = vadd.xlane.f32.xlu1 %v614_v53 }
 0x31e   :  { %620 = vrot.lane.b32.xlu1 %v3352_v35, %s3122_s20 }
 0x322   :  { %844 = vrot.lane.b32.xlu1 %v271_v27, %s3123_s6 }
 0x326   :  { %842 = vrot.lane.b32.xlu1 %v3336_v30, %s3123_s6 }
 0x327   :  { %v454_v54 = vpop.xlane.xlu0 %453 }
 0x328   :  { %2977 = vrcp.f32 %v454_v54 }
 0x32b   :  { %v932_v0 = vpop.permute.xlu0 %931 }
 0x32f   :  { %v1084_v23 = vpop.permute.xlu0 %1083 }
 0x332   :  { %v2978_v55 = vpop.eup %2977 }
 0x333   :  { %v456_v56 = vmul.f32 %v2978_v55, %v2974_v47 }
 0x335   :  { %2772 = vmatmul.mubr.msk.f32.vlgmr.msra.gmra.mrb[2].mxu1 %vm369_vm2, %v456_v56 }
 0x336   :  { %2781 = vmatprep.mubr.msk.f32.mxu1 %vm3121_vm1, %v3120_v20 }
 0x39a   :  { %v616_v58 = vpop.xlane.xlu1 %615 }
 0x39b   :  { %2979 = vrcp.f32 %v616_v58 }
 0x39e   :  { %v621_v59 = vpop.permute.xlu1 %620 }
 0x39f   :  { %2780 = vmatpush3.msra.mxu1 %v621_v59 }
 0x3a0   :  { %2789 = vmatprep.subr.mxu1 %v3120_v20 }
 0x3a2   :  { %v845_v2 = vpop.permute.xlu1 %844 }
 0x3a5   :  { %v2980_v60 = vpop.eup %2979 }
 0x3a6   :  { %v618_v61 = vmul.f32 %v2980_v60, %v2976_v52  ;;  %v843_v5 = vpop.permute.xlu1 %842 }
 0x3a8   :  { %2782 = vmatmul.mubr.msk.f32.vlgmr.msra.gmra.mrb[4].mxu1 %vm369_vm2, %v618_v61 }
 0x3a9   :  { %2790 = vmatpush3.msra.mxu1 %v3381_v62  ;;  %2791 = vmatprep.mubr.msk.f32.mxu1 %vm3121_vm1, %v3120_v20 }
 0x3aa   :  { %2799 = vmatprep.subr.mxu1 %v3120_v20 }
 0x408   :  { %v526_v63 = vpop.f32.mrb[2].mxu1 }
 0x409   :  { %v2773_v1 = vpop.f32.mrb[3].mxu1  ;;  %2792 = vmatmul.mubr.msk.f32.vlgmr.msra.gmra.mrb[6].mxu1 %vm369_vm2, %v526_v63 }
 0x40a   :  { %2800 = vmatpush3.msra.mxu1 %v932_v0  ;;  %2801 = vmatprep.mubr.msk.f32.mxu1 %vm3121_vm1, %v3120_v20 }
 0x40b   :  { %2809 = vmatprep.subr.mxu1 %v3120_v20 }
 0x47b   :  { %v692_v3 = vpop.f32.mrb[4].mxu1 }
 0x47c   :  { %v2783_v4 = vpop.f32.mrb[5].mxu1  ;;  %2787 = vmatmul.mubr.msk.f32.vlgmr.msra.gmra.mrb[8].mxu0 %vm369_vm2, %v692_v3 }
 0x47d   :  { %2795 = vmatpush3.xpose.msk.msra.mxu0 %vm369_vm2, %v845_v2  ;;  %2796 = vmatprep.mubr.msk.f32.mxu0 %vm3121_vm1, %v3120_v20 }
 0x47e   :  { %2804 = vmatprep.subr.mxu0 %v3120_v20 }
 0x480   :  { %2797 = vmatmul.mubr.msk.f32.vlgmr.msra.gmra.mrb[10].mxu0 %vm369_vm2, %v843_v5 }
 0x481   :  { %2806 = vmatprep.mubr.msk.f32.mxu0 %vm3121_vm1, %v3120_v20  ;;  %2805 = vmatpush3.msra.mxu0 %v3408_v22 }
 0x482   :  { %2814 = vmatprep.subr.mxu0 %v3120_v20 }
 0x4dc   :  { %v838_v6 = vpop.f32.mrb[6].mxu1 }
 0x4dd   :  { %v2793_v7 = vpop.f32.mrb[7].mxu1 }
 0x54f   :  { %v765_v8 = vpop.f32.mrb[8].mxu0 }
 0x550   :  { %v839_v9 = vadd.f32 %v838_v6, %v765_v8  ;;  %v2788_v10 = vpop.f32.mrb[9].mxu0 }
 0x553   :  { %v916_v12 = vpop.f32.mrb[10].mxu0 }
 0x554   :  { %v2798_v13 = vpop.f32.mrb[11].mxu0  ;;  %v920_v14 = vsel %vm369_vm2, %v916_v12, -inf }
 0x555   :  { %921 = vmax.xlane.f32.xlu1 %v920_v14 }
 0x566   :  { %1170 = vrot.lane.b32.xlu1 %v3352_v35, %s3124_s27 }
 0x56a   :  { %1482 = vrot.lane.b32.xlu1 %v3332_v24, %s3122_s20 }
 0x5e2   :  { %v922_v15 = vpop.xlane.xlu1 %921 }
 0x5e3   :  { %v923_v16 = vsub.f32 %v916_v12, %v922_v15 }
 0x5e5   :  { %v924_v17 = vmul.f32 1.442695, %v923_v16 }
 0x5e6   :  { %v1171_v31 = vpop.permute.xlu1 %1170 }
 0x5e7   :  { %2981 = vpow2.f32 %v924_v17 }
 0x5ea   :  { %v1483_v46 = vpop.permute.xlu1 %1482 }
 0x5f1   :  { %v2982_v19 = vpop.eup %2981 }
 0x5f2   :  { %v926_v21 = vsel %vm369_vm2, %v2982_v19, 0.0 }
 0x5f3   :  { %927 = vadd.xlane.f32.xlu0 %v926_v21 }
 0x609   :  { %1081 = vrot.lane.b32.xlu0 %v3336_v30, %s3124_s27 }
 0x680   :  { %v928_v25 = vpop.xlane.xlu0 %927 }
 0x681   :  { %2983 = vrcp.f32 %v928_v25 }
 0x684   :  { %v1082_v29 = vpop.permute.xlu0 %1081 }
 0x68b   :  { %v2984_v26 = vpop.eup %2983 }
 0x68c   :  { %v930_v27 = vmul.f32 %v2984_v26, %v2982_v19 }
 0x68e   :  { %2802 = vmatmul.mubr.msk.f32.vlgmr.msra.gmra.mrb[8].mxu1 %vm369_vm2, %v930_v27 }
 0x68f   :  { %2810 = vmatpush3.xpose.msk.msra.mxu1 %vm369_vm2, %v1084_v23  ;;  %2811 = vmatprep.mubr.msk.f32.mxu1 %vm3121_vm1, %v3120_v20 }
 0x690   :  { %2819 = vmatprep.subr.mxu1 %v3120_v20 }
 0x692   :  { %2812 = vmatmul.mubr.msk.f32.vlgmr.msra.gmra.mrb[10].mxu1 %vm369_vm2, %v1082_v29 }
 0x693   :  { %2821 = vmatprep.mubr.msk.f32.mxu1 %vm3121_vm1, %v3120_v20  ;;  %2820 = vmatpush3.msra.mxu1 %v3428_v42 }
 0x694   :  { %2829 = vmatprep.subr.mxu1 %v3120_v20 }
 0x761   :  { %v1003_v30 = vpop.f32.mrb[8].mxu1 }
 0x762   :  { %v2803_v32 = vpop.f32.mrb[9].mxu1  ;;  %2807 = vmatmul.mubr.msk.f32.vlgmr.msra.gmra.mrb[12].mxu0 %vm369_vm2, %v1003_v30 }
 0x763   :  { %2815 = vmatpush3.msra.mxu0 %v1171_v31  ;;  %2816 = vmatprep.mubr.msk.f32.mxu0 %vm3121_vm1, %v3120_v20 }
 0x764   :  { %2824 = vmatprep.subr.mxu0 %v3120_v20 }
 0x765   :  { %v1155_v34 = vpop.f32.mrb[10].mxu1 }
 0x766   :  { %v2813_v35 = vpop.f32.mrb[11].mxu1  ;;  %v1159_v36 = vsel %vm369_vm2, %v1155_v34, -inf }
 0x767   :  { %1160 = vmax.xlane.f32.xlu0 %v1159_v36 }
 0x7f4   :  { %v1161_v37 = vpop.xlane.xlu0 %1160 }
 0x7f5   :  { %v1162_v38 = vsub.f32 %v1155_v34, %v1161_v37 }
 0x7f7   :  { %v1163_v39 = vmul.f32 1.442695, %v1162_v38 }
 0x7f9   :  { %2985 = vpow2.f32 %v1163_v39 }
 0x803   :  { %v2986_v40 = vpop.eup %2985 }
 0x804   :  { %v1165_v41 = vsel %vm369_vm2, %v2986_v40, 0.0 }
 0x805   :  { %1166 = vadd.xlane.f32.xlu1 %v1165_v41 }
 0x816   :  { %1480 = vrot.lane.b32.xlu1 %v3334_v28, %s3122_s20 }
 0x835   :  { %v1076_v43 = vpop.f32.mrb[12].mxu0 }
 0x836   :  { %v1080_v44 = vadd.f32 %v1076_v43, %v839_v9  ;;  %v2808_v45 = vpop.f32.mrb[13].mxu0 }
 0x892   :  { %v1167_v47 = vpop.xlane.xlu1 %1166 }
 0x893   :  { %2987 = vrcp.f32 %v1167_v47 }
 0x896   :  { %v1481_v50 = vpop.permute.xlu1 %1480 }
 0x89d   :  { %v2988_v48 = vpop.eup %2987 }
 0x89e   :  { %v1169_v49 = vmul.f32 %v2988_v48, %v2986_v40 }
 0x8a0   :  { %2817 = vmatmul.mubr.msk.f32.vlgmr.msra.gmra.mrb[14].mxu0 %vm369_vm2, %v1169_v49 }
 0x8a1   :  { %2825 = vmatpush3.xpose.msk.msra.mxu0 %vm369_vm2, %v3332_v24  ;;  %2826 = vmatprep.mubr.msk.f32.mxu0 %vm3121_vm1, %v3120_v20 }
 0x8a2   :  { %2834 = vmatprep.subr.mxu0 %v3120_v20 }
 0x8a4   :  { %2827 = vmatmul.mubr.msk.f32.vlgmr.msra.gmra.mrb[16].mxu0 %vm369_vm2, %v3334_v28 }
 0x8a5   :  { %2835 = vmatpush3.xpose.msk.msra.mxu0 %vm369_vm2, %v1483_v46  ;;  %2836 = vmatprep.mubr.msk.f32.mxu0 %vm3121_vm1, %v3120_v20 }
 0x8a6   :  { %2844 = vmatprep.subr.mxu0 %v3120_v20 }
 0x8a8   :  { %2837 = vmatmul.mubr.msk.f32.vlgmr.msra.gmra.mrb[18].mxu0 %vm369_vm2, %v1481_v50 }
 0x8a9   :  { %2845 = vmatpush3.msra.mxu0 %v3376_v57  ;;  %2846 = vmatprep.mubr.msk.f32.mxu0 %vm3121_vm1, %v3120_v20 }
 0x8aa   :  { %2854 = vmatprep.subr.mxu0 %v3120_v20 }
 0x973   :  { %v1242_v51 = vpop.f32.mrb[14].mxu0 }
 0x974   :  { %v2818_v52 = vpop.f32.mrb[15].mxu0  ;;  %2822 = vmatmul.mubr.msk.f32.vlgmr.msra.gmra.mrb[12].mxu1 %vm369_vm2, %v1242_v51 }
 0x975   :  { %2830 = vmatpush3.msra.mxu1 %v3350_v33  ;;  %2831 = vmatprep.mubr.msk.f32.mxu1 %vm3121_vm1, %v3120_v20 }
 0x976   :  { %2839 = vmatprep.subr.mxu1 %v3120_v20 }
 0x977   :  { %v1392_v53 = vpop.f32.mrb[16].mxu0 }
 0x978   :  { %v2828_v54 = vpop.f32.mrb[17].mxu0  ;;  %v1396_v55 = vsel %vm369_vm2, %v1392_v53, -inf }
 0x979   :  { %1397 = vmax.xlane.f32.xlu1 %v1396_v55 }
 0x97b   :  { %v1554_v56 = vpop.f32.mrb[18].mxu0 }
 0x97c   :  { %v2838_v57 = vpop.f32.mrb[19].mxu0  ;;  %v1558_v58 = vsel %vm369_vm2, %v1554_v56, -inf }
 0x97d   :  { %1559 = vmax.xlane.f32.xlu0 %v1558_v58 }
 0x98a   :  { %1792 = vrot.lane.b32.xlu1 %v3334_v28, %s3123_s6 }
 0xa06   :  { %v1398_v59 = vpop.xlane.xlu1 %1397 }
 0xa07   :  { %v1399_v60 = vsub.f32 %v1392_v53, %v1398_v59  ;;  %v2636_v53 = vld [vmem:[%s3602_s8] ss:$0 sm:$0xff] }
 0xa09   :  { %v1400_v61 = vmul.f32 1.442695, %v1399_v60 }
 0xa0a   :  { %v1560_v63 = vpop.xlane.xlu0 %1559 }
 0xa0b   :  { %2989 = vpow2.f32 %v1400_v61  ;;  %v1561_v0 = vsub.f32 %v1554_v56, %v1560_v63 }
 0xa0d   :  { %v1562_v1 = vmul.f32 1.442695, %v1561_v0 }
 0xa0f   :  { %2991 = vpow2.f32 %v1562_v1 }
 0xa15   :  { %v2990_v2 = vpop.eup %2989 }
 0xa16   :  { %v1402_v3 = vsel %vm369_vm2, %v2990_v2, 0.0 }
 0xa17   :  { %1403 = vadd.xlane.f32.xlu0 %v1402_v3 }
 0xa19   :  { %v2992_v4 = vpop.eup %2991 }
 0xa1a   :  { %v1564_v5 = vsel %vm369_vm2, %v2992_v4, 0.0 }
 0xa1b   :  { %1565 = vadd.xlane.f32.xlu0 %v1564_v5 }
 0xa31   :  { %1570 = vrot.lane.b32.xlu0 %v3350_v33, %s3122_s20 }
 0xa35   :  { %1794 = vrot.lane.b32.xlu0 %v3332_v24, %s3123_s6 }
 0xa47   :  { %v1315_v6 = vpop.f32.mrb[12].mxu1 }
 0xa48   :  { %v3464_v7 = vadd.f32 %v1315_v6, %v1080_v44  ;;  %v2823_v8 = vpop.f32.mrb[13].mxu1 }
 0xa49   :  { %v2637_v8 = vld [vmem:[%s3603_s9] ss:$0 sm:$0xff]  ;;  %s3087_s9 = scalar_lea.vmem %s2583_s26, 256 }
 0xa4a   :  { %p3088_p10 = scmp.ne.s32.totalorder %s2583_s26, %s3087_s9  ;;  %p3093_p12 = scmp.lt.s32.totalorder %s3087_s9, %s3087_s9 }
 0xa4c   :  { %p3094_p13 = por %p3093_p12, %p3092_p11 }
 0xa4e   :  { %p3095_p0 = pnand %p3094_p13, %p3088_p10 }
 0xaa4   :  { %v1404_v9 = vpop.xlane.xlu0 %1403 }
 0xaa5   :  { %2993 = vrcp.f32 %v1404_v9 }
 0xaa8   :  { %v1566_v10 = vpop.xlane.xlu0 %1565 }
 0xaa9   :  { %2995 = vrcp.f32 %v1566_v10  ;;  %v2638_v10 = vld [vmem:[%s3604_s10] ss:$0 sm:$0xff] }
 0xaac   :  { %v1571_v14 = vpop.permute.xlu0 %1570 }
 0xaaf   :  { %v2994_v12 = vpop.eup %2993 }
 0xab0   :  { %v1406_v13 = vmul.f32 %v2994_v12, %v2990_v2  ;;  %v1795_v23 = vpop.permute.xlu0 %1794 }
 0xab2   :  { %2832 = vmatmul.mubr.msk.f32.vlgmr.msra.gmra.mrb[14].mxu1 %vm369_vm2, %v1406_v13 }
 0xab3   :  { %v2996_v15 = vpop.eup %2995  ;;  %2840 = vmatpush3.msra.mxu1 %v1571_v14  ;;  %2841 = vmatprep.mubr.msk.f32.mxu1 %vm3121_vm1, %v3120_v20 }
 0xab4   :  { %v1568_v16 = vmul.f32 %v2996_v15, %v2992_v4  ;;  %2849 = vmatprep.subr.mxu1 %v3120_v20 }
 0xab6   :  { %2842 = vmatmul.mubr.msk.f32.vlgmr.msra.gmra.mrb[16].mxu1 %vm369_vm2, %v1568_v16 }
 0xab7   :  { %2850 = vmatpush3.msra.mxu1 %v3381_v62  ;;  %2851 = vmatprep.mubr.msk.f32.mxu1 %vm3121_vm1, %v3120_v20  ;;  %v1793_v62 = vpop.permute.xlu1 %1792 }
 0xab8   :  { %2859 = vmatprep.subr.mxu1 %v3120_v20 }
 0xb85   :  { %v1476_v17 = vpop.f32.mrb[14].mxu1 }
 0xb86   :  { %v2833_v19 = vpop.f32.mrb[15].mxu1  ;;  %2852 = vmatmul.mubr.msk.f32.vlgmr.msra.gmra.mrb[18].mxu1 %vm369_vm2, %v1476_v17 }
 0xb87   :  { %2861 = vmatprep.mubr.msk.f32.mxu1 %vm3121_vm1, %v3120_v20 }
 0xb89   :  { %v1642_v21 = vpop.f32.mrb[16].mxu1 }
 0xb8a   :  { %v2843_v25 = vpop.f32.mrb[17].mxu1  ;;  %2847 = vmatmul.mubr.msk.f32.vlgmr.msra.gmra.mrb[20].mxu0 %vm369_vm2, %v1642_v21 }
 0xb8b   :  { %2855 = vmatpush3.xpose.msk.msra.mxu0 %vm369_vm2, %v1795_v23  ;;  %2856 = vmatprep.mubr.msk.f32.mxu0 %vm3121_vm1, %v3120_v20 }
 0xb8c   :  { %2864 = vmatprep.subr.mxu0 %v3120_v20 }
 0xb8e   :  { %2857 = vmatmul.mubr.msk.f32.vlgmr.msra.gmra.mrb[22].mxu0 %vm369_vm2, %v1793_v62 }
 0xb8f   :  { %2865 = vmatpush3.msra.mxu0 %v3408_v22  ;;  %2866 = vmatprep.mubr.msk.f32.mxu0 %vm3121_vm1, %v3120_v20 }
 0xb90   :  { %2874 = vmatprep.subr.mxu0 %v3120_v20 }
 0xc59   :  { %v1788_v26 = vpop.f32.mrb[18].mxu1 }
 0xc5a   :  { %v2853_v27 = vpop.f32.mrb[19].mxu1 }
 0xc5d   :  { %v1715_v29 = vpop.f32.mrb[20].mxu0 }
 0xc5e   :  { %v1789_v30 = vadd.f32 %v1788_v26, %v1715_v29  ;;  %v2848_v31 = vpop.f32.mrb[21].mxu0 }
 0xc5f   :  { %v2326_v31 = vld [vmem:[#allocation7] sm:$0xff] }
 0xc61   :  { %v1866_v32 = vpop.f32.mrb[22].mxu0 }
 0xc62   :  { %v2858_v34 = vpop.f32.mrb[23].mxu0  ;;  %v1870_v35 = vsel %vm369_vm2, %v1866_v32, -inf }
 0xc63   :  { %1871 = vmax.xlane.f32.xlu0 %v1870_v35  ;;  %v2328_v35 = vld [vmem:[#allocation7 + $0x10] sm:$0xff] }
 0xc79   :  { %1881 = vrot.lane.b32.xlu0 %v3350_v33, %s3123_s6 }
 0xc7d   :  { %2031 = vrot.lane.b32.xlu0 %v3334_v28, %s3124_s27 }
 0xcf0   :  { %v1872_v22 = vpop.xlane.xlu0 %1871 }
 0xcf1   :  { %v1873_v36 = vsub.f32 %v1866_v32, %v1872_v22  ;;  %v2327_v32 = vld [vmem:[#allocation7 + $0x8] sm:$0xff]  ;;  %v2329_v22 = vld [vmem:[#allocation7 + $0x18] sm:$0xff] }
 0xcf2   :  { %v2938_v34 = vpack.c.bf16 %v2327_v32, %v2326_v31 }
 0xcf3   :  { %v1874_v37 = vmul.f32 1.442695, %v1873_v36  ;;  %v2942_v36 = vpack.c.bf16 %v2329_v22, %v2328_v35  ;;  %v2648_v22 = vld [vmem:[%s3610_s16] ss:$0 sm:$0xff] }
 0xcf4   :  { %v1882_v38 = vpop.permute.xlu0 %1881 }
 0xcf5   :  { %2997 = vpow2.f32 %v1874_v37  ;;  %2860 = vmatpush3.msra.mxu1 %v1882_v38 }
 0xcf6   :  { %2869 = vmatprep.subr.mxu1 %v3120_v20 }
 0xcf8   :  { %v2032_v45 = vpop.permute.xlu0 %2031 }
 0xcff   :  { %v2998_v39 = vpop.eup %2997 }
 0xd00   :  { %v1876_v40 = vsel %vm369_vm2, %v2998_v39, 0.0 }
 0xd01   :  { %1877 = vadd.xlane.f32.xlu1 %v1876_v40 }
 0xd12   :  { %2033 = vrot.lane.b32.xlu1 %v3332_v24, %s3124_s27 }
 0xd8e   :  { %v1878_v41 = vpop.xlane.xlu1 %1877 }
 0xd8f   :  { %2999 = vrcp.f32 %v1878_v41 }
 0xd92   :  { %v2034_v28 = vpop.permute.xlu1 %2033 }
 0xd99   :  { %v3000_v43 = vpop.eup %2999 }
 0xd9a   :  { %v1880_v44 = vmul.f32 %v3000_v43, %v2998_v39 }
 0xd9c   :  { %2862 = vmatmul.mubr.msk.f32.vlgmr.msra.gmra.mrb[20].mxu1 %vm369_vm2, %v1880_v44  ;;  %v2432_v44 = vld [vmem:[%s3607_s13] sm:$0xff] }
 0xd9d   :  { %2870 = vmatpush3.xpose.msk.msra.mxu1 %vm369_vm2, %v2034_v28  ;;  %2871 = vmatprep.mubr.msk.f32.mxu1 %vm3121_vm1, %v3120_v20  ;;  %v2433_v28 = vld [vmem:[%s3607_s13 + $0x8] sm:$0xff] }
 0xd9e   :  { %2879 = vmatprep.subr.mxu1 %v3120_v20 }
 0xda0   :  { %2872 = vmatmul.mubr.msk.f32.vlgmr.msra.gmra.mrb[22].mxu1 %vm369_vm2, %v2032_v45  ;;  %v2946_v45 = vpack.c.bf16 %v2433_v28, %v2432_v44 }
 0xda1   :  { %2880 = vmatpush3.msra.mxu1 %v3428_v42  ;;  %2881 = vmatprep.mubr.msk.f32.mxu1 %vm3121_vm1, %v3120_v20 }
 0xda2   :  { %2947 = vmatprep.subr.bf16.mxu1 %v2946_v45 }
 0xe6f   :  { %v1953_v24 = vpop.f32.mrb[20].mxu1 }
 0xe70   :  { %v2863_v46 = vpop.f32.mrb[21].mxu1  ;;  %2867 = vmatmul.mubr.msk.f32.vlgmr.msra.gmra.mrb[24].mxu0 %vm369_vm2, %v1953_v24  ;;  %v2434_v24 = vld [vmem:[%s3607_s13 + $0x10] sm:$0xff] }
 0xe71   :  { %2876 = vmatprep.mubr.msk.f32.mxu0 %vm3121_vm1, %v3120_v20  ;;  %v2277_v20 = vadd.f32 %v2636_v53, %v3464_v7  ;;  %v2435_v46 = vld [vmem:[%s3607_s13 + $0x18] sm:$0xff] }
 0xe73   :  { %v2105_v47 = vpop.f32.mrb[22].mxu1  ;;  %v2279_v56 = vadd.f32 %v2277_v20, %v3292_v11 }
 0xe74   :  { %v2873_v48 = vpop.f32.mrb[23].mxu1  ;;  %v2109_v49 = vsel %vm369_vm2, %v2105_v47, -inf }
 0xe75   :  { %2110 = vmax.xlane.f32.xlu0 %v2109_v49  ;;  %v2436_v48 = vld [vmem:[%s3607_s13 + $0x20] sm:$0xff]  ;;  %v2437_v49 = vld [vmem:[%s3607_s13 + $0x28] sm:$0xff] }
 0xe8b   :  { %2120 = vrot.lane.b32.xlu0 %v3350_v33, %s3124_s27  ;;  %v2283_v33 = vsel %vm111_vm0, %v2279_v56, 0.0 }
 0xf02   :  { %v2111_v50 = vpop.xlane.xlu0 %2110 }
 0xf03   :  { %v2112_v42 = vsub.f32 %v2105_v47, %v2111_v50  ;;  %v2950_v47 = vpack.c.bf16 %v2435_v46, %v2434_v24  ;;  %v2954_v50 = vpack.c.bf16 %v2437_v49, %v2436_v48 }
 0xf05   :  { %v2113_v51 = vmul.f32 1.442695, %v2112_v42  ;;  %v2438_v42 = vld [vmem:[%s3607_s13 + $0x30] sm:$0xff] }
 0xf06   :  { %v2121_v52 = vpop.permute.xlu0 %2120 }
 0xf07   :  { %3001 = vpow2.f32 %v2113_v51  ;;  %2875 = vmatpush3.msra.mxu0 %v2121_v52  ;;  %v2439_v51 = vld [vmem:[%s3607_s13 + $0x38] sm:$0xff] }
 0xf08   :  { %2939 = vmatprep.subr.bf16.mxu0 %v2938_v34  ;;  %v2958_v52 = vpack.c.bf16 %v2439_v51, %v2438_v42 }
 0xf11   :  { %v3002_v54 = vpop.eup %3001 }
 0xf12   :  { %v2115_v55 = vsel %vm369_vm2, %v3002_v54, 0.0 }
 0xf13   :  { %2116 = vadd.xlane.f32.xlu1 %v2115_v55 }
 0xf17   :  { %2284 = vadd.xlane.f32.xlu1 %v2283_v33 }
 0xf43   :  { %v2026_v57 = vpop.f32.mrb[24].mxu0 }
 0xf44   :  { %v2030_v58 = vadd.f32 %v2026_v57, %v1789_v30  ;;  %v2868_v59 = vpop.f32.mrb[25].mxu0 }
 0xfa0   :  { %v2117_v60 = vpop.xlane.xlu1 %2116 }
 0xfa1   :  { %3003 = vrcp.f32 %v2117_v60 }
 0xfa4   :  { %v2285_v61 = vpop.xlane.xlu1 %2284 }
 0xfa5   :  { %v2290_v63 = vmul.f32 0.03125, %v2285_v61 }
 0xfa7   :  { %v2292_v0 = vsub.f32 %v2279_v56, %v2290_v63 }
 0xfa9   :  { %v2294_v1 = vmul.f32 %v2292_v0, %v2292_v0 }
 0xfab   :  { %v3004_v2 = vpop.eup %3003  ;;  %v2296_v3 = vsel %vm111_vm0, %v2294_v1, 0.0 }
 0xfac   :  { %v2119_v4 = vmul.f32 %v3004_v2, %v3002_v54  ;;  %2297 = vadd.xlane.f32.xlu0 %v2296_v3  ;;  %v2644_v3 = vld [vmem:[%s3608_s14] ss:$0 sm:$0xff] }
 0xfae   :  { %2877 = vmatmul.mubr.msk.f32.vlgmr.msra.gmra.mrb[26].mxu0 %vm369_vm2, %v2119_v4 }
 0xfaf   :  { %2941 = vmatpush3.bf16.msra.mxu0 %v2938_v34  ;;  %v2647_v34 = vld [vmem:[%s3609_s15] ss:$0 sm:$0xff] }
 0xfb0   :  { %2943 = vmatprep.subr.bf16.mxu0 %v2942_v36 }
 0xfb3   :  { %2945 = vmatpush3.bf16.msra.mxu0 %v2942_v36 }
0x1039   :  { %v2298_v11 = vpop.xlane.xlu0 %2297 }
0x103a   :  { %v2302_v5 = vmul.f32 0.03125, %v2298_v11 }
0x103c   :  { %v2304_v6 = vadd.f32 1e-05, %v2302_v5 }
0x103e   :  { %3005 = vrsqrt.f32 %v2304_v6 }
0x1048   :  { %v3006_v7 = vpop.eup %3005 }
0x1049   :  { %v2308_v9 = vmul.f32 %v3006_v7, %v2292_v0 }
0x104b   :  { %v2316_v12 = vmul.f32 %v2637_v8, %v2308_v9 }
0x104d   :  { %v3527_v13 = vadd.f32 %v2638_v10, %v2316_v12 }
0x104f   :  { %2892 = vmatprep.mubr.msk.f32.mxu0 %vm111_vm0, %v3527_v13 }
0x1081   :  { %v2192_v14 = vpop.f32.mrb[26].mxu0 }
0x1082   :  { %v2878_v15 = vpop.f32.mrb[27].mxu0  ;;  %2882 = vmatmul.mubr.msk.f32.vlgmr.msra.gmra.mrb[24].mxu1 %vm369_vm2, %v2192_v14 }
0x1083   :  { %2949 = vmatpush3.bf16.msra.mxu1 %v2946_v45 }
0x1084   :  { %2951 = vmatprep.subr.bf16.mxu1 %v2950_v47 }
0x1087   :  { %2953 = vmatpush3.bf16.msra.mxu1 %v2950_v47 }
0x1088   :  { %2955 = vmatprep.subr.bf16.mxu1 %v2954_v50 }
0x108b   :  { %2957 = vmatpush3.bf16.msra.mxu1 %v2954_v50 }
0x108c   :  { %2959 = vmatprep.subr.bf16.mxu1 %v2958_v52 }
0x108f   :  { %2961 = vmatpush3.bf16.msra.mxu1 %v2958_v52 }
0x1155   :  { %v2265_v16 = vpop.f32.mrb[24].mxu1 }
0x1156   :  { %v2269_v17 = vadd.f32 %v2265_v16, %v2030_v58  ;;  %v2883_v19 = vpop.f32.mrb[25].mxu1 }
0x1158   :  { %v2278_v21 = vadd.f32 %v2636_v53, %v2269_v17  ;;  %v2639_v53 = vld [vmem:[%s3606_s12] ss:$0 sm:$0xff] }
0x115a   :  { %v2280_v23 = vadd.f32 %v2278_v21, %v3310_v18 }
0x115c   :  { %v2286_v25 = vsel %vm111_vm0, %v2280_v23, 0.0 }
0x115d   :  { %2287 = vadd.xlane.f32.xlu1 %v2286_v25 }
0x11ea   :  { %v2288_v62 = vpop.xlane.xlu1 %2287 }
0x11eb   :  { %v2291_v26 = vmul.f32 0.03125, %v2288_v62 }
0x11ed   :  { %v2293_v27 = vsub.f32 %v2280_v23, %v2291_v26 }
0x11ef   :  { %v2295_v29 = vmul.f32 %v2293_v27, %v2293_v27 }
0x11f1   :  { %v2299_v30 = vsel %vm111_vm0, %v2295_v29, 0.0 }
0x11f2   :  { %2300 = vadd.xlane.f32.xlu1 %v2299_v30 }
0x127f   :  { %v2301_v18 = vpop.xlane.xlu1 %2300 }
0x1280   :  { %v2303_v37 = vmul.f32 0.03125, %v2301_v18 }
0x1282   :  { %v2305_v38 = vadd.f32 1e-05, %v2303_v37 }
0x1284   :  { %3007 = vrsqrt.f32 %v2305_v38 }
0x128e   :  { %v3008_v39 = vpop.eup %3007 }
0x128f   :  { %v2309_v40 = vmul.f32 %v3008_v39, %v2293_v27 }
0x1291   :  { %v2317_v41 = vmul.f32 %v2637_v8, %v2309_v40 }
0x1293   :  { %v2325_v43 = vadd.f32 %v2638_v10, %v2317_v41 }
0x1295   :  { %2893 = vmatmul.mubr.msk.f32.vlgmr.msra.gmra.mrb[28].mxu0 %vm111_vm0, %v2325_v43 }
0x1368   :  { %v2894_v20 = vpop.f32.mrb[28].mxu0 }
0x1369   :  { %v2415_v54 = vadd.f32 %v2894_v20, %v2639_v53  ;;  %v2409_v55 = vpop.f32.mrb[29].mxu0 }
0x136a   :  { %v2410_v56 = vadd.f32 %v2639_v53, %v2409_v55 }
0x136b   :  { %v2643_v33 = vmul.f32 -1.442695, %v2415_v54 }
0x136c   :  { %v2642_v57 = vmul.f32 -1.442695, %v2410_v56 }
0x136d   :  { %3009 = vpow2.f32 %v2643_v33 }
0x136e   :  { %3011 = vpow2.f32 %v2642_v57 }
0x1377   :  { %v3010_v58 = vpop.eup %3009 }
0x1378   :  { %v3012_v59 = vpop.eup %3011  ;;  %v2425_v60 = vadd.f32 1.0, %v3010_v58 }
0x1379   :  { %v2424_v61 = vadd.f32 1.0, %v3012_v59 }
0x137a   :  { %3013 = vrcp.f32 %v2425_v60 }
0x137b   :  { %3015 = vrcp.f32 %v2424_v61 }
0x1384   :  { %v3014_v63 = vpop.eup %3013 }
0x1385   :  { %v3016_v0 = vpop.eup %3015  ;;  %v2431_v2 = vmul.f32 %v3014_v63, %v2415_v54 }
0x1386   :  { %v2430_v1 = vmul.f32 %v3016_v0, %v2410_v56 }
0x1388   :  { %2911 = vmatprep.mubr.msk.f32.mxu1 %vm2447_vm3, %v2430_v1 }
0x1389   :  { %2912 = vmatmul.mubr.msk.f32.vlgmr.msra.gmra.mrb[26].mxu1 %vm2447_vm3, %v2431_v2 }
0x145c   :  { %v2913_v4 = vpop.f32.mrb[26].mxu1 }
0x145d   :  { %v2520_v11 = vpop.f32.mrb[27].mxu1  ;;  %v2526_v5 = vadd.f32 %v2913_v4, %v2644_v3 }
0x145e   :  { %v2521_v6 = vadd.f32 %v2644_v3, %v2520_v11 }
0x145f   :  { %v2530_v9 = vadd.f32 %v2526_v5, %v2325_v43 }
0x1460   :  { %v2529_v7 = vadd.f32 %v2521_v6, %v3527_v13 }
0x1461   :  { %v2536_v10 = vsel %vm111_vm0, %v2530_v9, 0.0 }
0x1462   :  { %v2533_v8 = vsel %vm111_vm0, %v2529_v7, 0.0 }
0x1463   :  { %2534 = vadd.xlane.f32.xlu1 %v2533_v8 }
0x1467   :  { %2537 = vadd.xlane.f32.xlu1 %v2536_v10 }
0x14f0   :  { %v2535_v12 = vpop.xlane.xlu1 %2534 }
0x14f1   :  { %v2539_v14 = vmul.f32 0.03125, %v2535_v12 }
0x14f3   :  { %v2541_v15 = vsub.f32 %v2529_v7, %v2539_v14 }
0x14f4   :  { %v2538_v16 = vpop.xlane.xlu1 %2537 }
0x14f5   :  { %v2540_v17 = vmul.f32 0.03125, %v2538_v16  ;;  %v2543_v19 = vmul.f32 %v2541_v15, %v2541_v15 }
0x14f7   :  { %v2542_v21 = vsub.f32 %v2530_v9, %v2540_v17  ;;  %v2545_v23 = vsel %vm111_vm0, %v2543_v19, 0.0 }
0x14f8   :  { %2546 = vadd.xlane.f32.xlu1 %v2545_v23 }
0x14f9   :  { %v2544_v25 = vmul.f32 %v2542_v21, %v2542_v21 }
0x14fb   :  { %v2548_v13 = vsel %vm111_vm0, %v2544_v25, 0.0 }
0x14fc   :  { %2549 = vadd.xlane.f32.xlu1 %v2548_v13 }
0x1585   :  { %v2547_v62 = vpop.xlane.xlu1 %2546 }
0x1586   :  { %v2551_v26 = vmul.f32 0.03125, %v2547_v62 }
0x1588   :  { %v2553_v27 = vadd.f32 1e-05, %v2551_v26 }
0x1589   :  { %v2550_v29 = vpop.xlane.xlu1 %2549 }
0x158a   :  { %3017 = vrsqrt.f32 %v2553_v27  ;;  %v2552_v30 = vmul.f32 0.03125, %v2550_v29 }
0x158c   :  { %v2554_v31 = vadd.f32 1e-05, %v2552_v30 }
0x158e   :  { %3019 = vrsqrt.f32 %v2554_v31 }
0x1594   :  { %v3018_v32 = vpop.eup %3017 }
0x1595   :  { %v2557_v35 = vmul.f32 %v3018_v32, %v2541_v15 }
0x1597   :  { %v2565_v36 = vmul.f32 %v2647_v34, %v2557_v35 }
0x1598   :  { %v3020_v18 = vpop.eup %3019 }
0x1599   :  { %v2558_v37 = vmul.f32 %v3020_v18, %v2542_v21  ;;  %v2573_v38 = vadd.f32 %v2648_v22, %v2565_v36 }
0x159b   :  { %v2566_v39 = vmul.f32 %v2647_v34, %v2558_v37  ;;  %2575 = vst.msk [vmem:[#allocation8] sm:$0xff] %vm111_vm0, %v2573_v38 }
0x159d   :  { %v2574_v40 = vadd.f32 %v2648_v22, %v2566_v39 }
0x159f   :  { %2576 = vst.msk [vmem:[#allocation8 + $0x8] sm:$0xff] %vm111_vm0, %v2574_v40 }
0x15a0   :  { %3098 = shalt.err (!%p3095_p0)
}
0x15a1   :  { %s3099_s10 = scalar_lea.hbm %s3611_s17, 256 }
0x15a2   :  { %p3100_p1 = scmp.ne.s32.totalorder %s3611_s17, %s3099_s10  ;;  %p3103_p2 = scmp.lt.u32.totalorder %s3099_s10, %s3611_s17 }
0x15a4   :  { %p3105_p3 = pnand %p3103_p2, %p3100_p1 }
0x15a6   :  { %3108 = shalt.err (!%p3105_p3)
}
0x15a7   :  { %2588 = dma.vmem_to_hbm [thread:$0]  %s2583_s26, 256, %s3611_s17, [#allocation4], %s3117_s21, %s3117_s21, %s3118_s22  }
0x15a8   :  { %3113 = dma.done.wait [#allocation4], 256  }
0x15a9   :  { %3114 = vsyncadd [#allocation4], 4294967040 }
0x15aa   :  { %2592 = vsyncpa [#allocation3], 1 }
0x15ab   :  { %2593 = vsyncpa [#allocation6], 1 }
0x15ac   :  { %2594 = vsyncpa [#allocation4], 1 }

</bundles_post_ra>
